<compile_context>
chip_gen: v6e
topology: v6e:2x2x1
jax: 0.10.0
libtpu: 0.0.40
codegen_flags: <defaults>
</compile_context>

<pallas_src>
import jax
import jax.numpy as jnp
from jax.experimental import pallas as pl
from jax.experimental.pallas import tpu as pltpu


CPAD = 128                       # lane-dense channel padding (vreg lane width)
VMEM_LIMIT = 32 * 1024 * 1024    # explicit scoped-VMEM budget (safe on v5e/v6e/v7x)


def _round_up(x, m):
    return ((x + m - 1) // m) * m


# ----------------------------------------------------------------------------
# Pallas kernels
# ----------------------------------------------------------------------------
def _matmul_bias_kernel(x_ref, w_ref, b_ref, o_ref):
    o_ref[...] = (
        jnp.dot(x_ref[...], w_ref[...], preferred_element_type=jnp.float32)
        + b_ref[...]
    )


def matmul_bias(x, w, b, *, tile_m=512):
    """(M,K) @ (K,N) + (N,): row-tiled, bf16 operands, f32 accumulate (MXU)."""
    M, K = x.shape
    K2, N = w.shape
    assert K == K2
    tm = min(tile_m, _round_up(M, 8))
    grid_m = pl.cdiv(M, tm)
    b2 = b.reshape(1, N).astype(jnp.float32)
    return pl.pallas_call(
        _matmul_bias_kernel,
        out_shape=jax.ShapeDtypeStruct((M, N), jnp.float32),
        grid=(grid_m,),
        in_specs=[
            pl.BlockSpec((tm, K), lambda i: (i, 0)),
            pl.BlockSpec((K, N), lambda i: (0, 0)),   # weight resident across tiles
            pl.BlockSpec((1, N), lambda i: (0, 0)),   # bias resident across tiles
        ],
        out_specs=pl.BlockSpec((tm, N), lambda i: (i, 0)),
        compiler_params=pltpu.CompilerParams(
            dimension_semantics=("parallel",), vmem_limit_bytes=VMEM_LIMIT
        ),
    )(x.astype(jnp.bfloat16), w.astype(jnp.bfloat16), b2)


def _warp_blend_kernel(v00_ref, v01_ref, v10_ref, v11_ref, fx_ref, fy_ref, o_ref):
    fx = fx_ref[...]
    fy = fy_ref[...]
    w00 = (1.0 - fy) * (1.0 - fx)
    w01 = (1.0 - fy) * fx
    w10 = fy * (1.0 - fx)
    w11 = fy * fx
    o_ref[...] = (
        v00_ref[...] * w00
        + v01_ref[...] * w01
        + v10_ref[...] * w10
        + v11_ref[...] * w11
    )


def warp_blend(v00, v01, v10, v11, fx, fy, *, tile_m=1024):
    """Tiled 4-tap bilinear blend; blend weights computed in-kernel from fx, fy."""
    M, C = v00.shape
    tm = min(tile_m, _round_up(M, 8))
    grid_m = pl.cdiv(M, tm)
    v_spec = pl.BlockSpec((tm, C), lambda i: (i, 0))
    f_spec = pl.BlockSpec((tm, 1), lambda i: (i, 0))
    return pl.pallas_call(
        _warp_blend_kernel,
        out_shape=jax.ShapeDtypeStruct((M, C), jnp.float32),
        grid=(grid_m,),
        in_specs=[v_spec, v_spec, v_spec, v_spec, f_spec, f_spec],
        out_specs=pl.BlockSpec((tm, C), lambda i: (i, 0)),
        compiler_params=pltpu.CompilerParams(
            dimension_semantics=("parallel",), vmem_limit_bytes=VMEM_LIMIT
        ),
    )(v00, v01, v10, v11, fx, fy)


# ----------------------------------------------------------------------------
# Fused bilinear upsample (align_corners=False), NHWC, no HBM transposes
# ----------------------------------------------------------------------------
def _interp_matrix(in_size, scale):
    """Dense 1-D bilinear upsampling matrix, PyTorch align_corners=False."""
    out_size = in_size * scale
    o = jnp.arange(out_size, dtype=jnp.float32)
    src = (o + 0.5) / scale - 0.5
    i0 = jnp.floor(src)
    frac = src - i0
    i0c = jnp.clip(i0, 0, in_size - 1).astype(jnp.int32)
    i1c = jnp.clip(i0 + 1, 0, in_size - 1).astype(jnp.int32)
    A = (
        jax.nn.one_hot(i0c, in_size, dtype=jnp.float32) * (1.0 - frac)[:, None]
        + jax.nn.one_hot(i1c, in_size, dtype=jnp.float32) * frac[:, None]
    )
    return A  # (out_size, in_size)


def upsample_bilinear_nhwc(x, scale):
    """F.interpolate(scale_factor=scale, mode='bilinear', align_corners=False).

    Single fused Pallas kernel per image row: H-axis is a 2-tap VPU lerp of two
    clamped source rows (picked via computed index_maps), W-axis is a small
    in-VMEM interp-matrix matmul. One pallas_call, zero XLA transposes."""
    x = x.astype(jnp.float32)
    N, H, W, C = x.shape
    H_out, W_out = H * scale, W * scale
    aw = _interp_matrix(W, scale)  # (W_out, W)

    def kernel(xm_ref, xc_ref, xp_ref, aw_ref, o_ref):
        xm = xm_ref[0, 0]          # row i-1 (clamped)
        xc = xc_ref[0, 0]          # row i
        xp = xp_ref[0, 0]          # row i+1 (clamped)
        awm = aw_ref[...]
        for r in range(scale):     # static unroll over the H output phases
            d = (2 * r + 1 - scale) // (2 * scale)     # -1 or 0 (Python floor)
            f = (r + 0.5) / scale - 0.5 - d            # static frac in [0,1)
            lo, hi = (xm, xc) if d == -1 else (xc, xp)
            row = (1.0 - f) * lo + f * hi              # (W, C) lerp along H
            o_ref[0, r] = jnp.dot(awm, row, preferred_element_type=jnp.float32)

    return pl.pallas_call(
        kernel,
        out_shape=jax.ShapeDtypeStruct((N, H_out, W_out, C), jnp.float32),
        grid=(N, H),
        in_specs=[
            pl.BlockSpec((1, 1, W, C), lambda n, i: (n, jnp.maximum(i - 1, 0), 0, 0)),
            pl.BlockSpec((1, 1, W, C), lambda n, i: (n, i, 0, 0)),
            pl.BlockSpec((1, 1, W, C), lambda n, i: (n, jnp.minimum(i + 1, H - 1), 0, 0)),
            pl.BlockSpec((W_out, W), lambda n, i: (0, 0)),
        ],
        out_specs=pl.BlockSpec((1, scale, W_out, C), lambda n, i: (n, i, 0, 0)),
        compiler_params=pltpu.CompilerParams(
            dimension_semantics=("parallel", "parallel"), vmem_limit_bytes=VMEM_LIMIT
        ),
    )(x, x, x, aw)


# ----------------------------------------------------------------------------
# Building blocks (glue reshapes + Pallas compute)
# ----------------------------------------------------------------------------
def patch_conv_nchw(x_nchw, patch, w, b):
    """Stride-`patch`, kernel `patch`x`patch` conv as patch-flatten + Pallas matmul."""
    N, C, H, W = x_nchw.shape
    Ho, Wo = H // patch, W // patch
    x = jnp.transpose(x_nchw, (0, 2, 3, 1))                       # NHWC
    x = x.reshape(N, Ho, patch, Wo, patch, C)
    x = jnp.transpose(x, (0, 1, 3, 2, 4, 5)).reshape(N * Ho * Wo, patch * patch * C)
    y = matmul_bias(x, w, b)
    return y.reshape(N, Ho, Wo, -1)                               # NHWC (padded ch)


def _warp_gather_tables(flows, H, W):
    """Precompute corner gather indices + fractions for ALL flows at once.
    flows: (T, N, H, W, 2) pixel displacements.
    # TODO(synk): warp() module source not provided; border-clamped bilinear
    # backward-warp assumed (grid_sample default is zeros padding)."""
    ys, xs = jnp.meshgrid(
        jnp.arange(H, dtype=jnp.float32),
        jnp.arange(W, dtype=jnp.float32),
        indexing="ij",
    )
    gx = xs[None, None] + flows[..., 0]                 # (T, N, H, W)
    gy = ys[None, None] + flows[..., 1]
    x0 = jnp.floor(gx)
    y0 = jnp.floor(gy)
    fx = (gx - x0)
    fy = (gy - y0)
    x0c = jnp.clip(x0, 0, W - 1).astype(jnp.int32)
    x1c = jnp.clip(x0 + 1, 0, W - 1).astype(jnp.int32)
    y0c = jnp.clip(y0, 0, H - 1).astype(jnp.int32)
    y1c = jnp.clip(y0 + 1, 0, H - 1).astype(jnp.int32)
    T, N = flows.shape[0], flows.shape[1]

    def flat(yc, xc):
        return (yc * W + xc).reshape(T, N, H * W, 1)

    return (
        flat(y0c, x0c), flat(y0c, x1c), flat(y1c, x0c), flat(y1c, x1c),
        fx.reshape(T, N * H * W, 1), fy.reshape(T, N * H * W, 1),
    )


def _warp_step(pred, i00, i01, i10, i11, fx, fy):
    """One backward bilinear warp of pred.
    # TODO(synk): move the corner gather into the kernel (DMA gather); for now the
    # data-dependent gather stays in JAX, only the blend runs in Pallas."""
    N, H, W, C = pred.shape
    flat = pred.reshape(N, H * W, C)

    def gather(idx):
        return jnp.take_along_axis(flat, idx, axis=1).reshape(N * H * W, C)

    out = warp_blend(gather(i00), gather(i01), gather(i10), gather(i11), fx, fy)
    return out.reshape(N, H, W, C)


# ----------------------------------------------------------------------------
# Parameters (deterministic, synthetic; output channels zero-padded to CPAD=128)
# ----------------------------------------------------------------------------
def init_params(key, num_classes=15, img_ch=3):
    ks = jax.random.split(key, 4)

    def xavier(k, shape):
        fan_in, fan_out = shape
        std = (2.0 / (fan_in + fan_out)) ** 0.5
        return std * jax.random.normal(k, shape, jnp.float32)

    def pad_out(w, b, n_pad=CPAD):
        k_dim, n = w.shape
        wp = jnp.zeros((k_dim, n_pad), jnp.float32).at[:, :n].set(w)
        bp = jnp.zeros((n_pad,), jnp.float32).at[:n].set(b)
        return wp, bp

    p = {}
    # deeplabv2 stand-ins (net_ref / net_update): stride-8 8x8 patch classifiers
    ref_w = xavier(ks[0], (8 * 8 * img_ch, num_classes))
    p["ref_w"], p["ref_b"] = pad_out(ref_w, jnp.zeros((num_classes,), jnp.float32))
    upd_w = xavier(ks[1], (8 * 8 * img_ch, num_classes))
    p["upd_w"], p["upd_b"] = pad_out(upd_w, jnp.zeros((num_classes,), jnp.float32))
    # FlowNets stand-in: stride-4 4x4 patch -> 2-channel flow at 1/4 resolution
    flow_w = 0.1 * xavier(ks[2], (4 * 4 * 2 * img_ch, 2))
    p["flow_w"], p["flow_b"] = pad_out(flow_w, jnp.zeros((2,), jnp.float32))
    # merge = nn.Conv2d(2*nc, nc, 1): xavier_normal_, bias=0 — embedded into the
    # channel-padded (2*CPAD, CPAD) layout of the concatenated [pred, pred_update].
    mw = xavier(ks[3], (2 * num_classes, num_classes))
    merge_w = jnp.zeros((2 * CPAD, CPAD), jnp.float32)
    merge_w = merge_w.at[:num_classes, :num_classes].set(mw[:num_classes])
    merge_w = merge_w.at[CPAD:CPAD + num_classes, :num_classes].set(mw[num_classes:])
    p["merge_w"] = merge_w
    p["merge_b"] = jnp.zeros((CPAD,), jnp.float32)
    return p


# ----------------------------------------------------------------------------
# Forward (flow_consist=False, gt=None -> returns pred_merge)
# ----------------------------------------------------------------------------
def accel101_sfc_forward(params, im_seg_list, im_flow_list, num_classes=15):
    # im_seg_list / im_flow_list: (n, c, t, h, w), NCHW per frame (PyTorch layout)
    n, c, t, h, w = im_seg_list.shape
    nc = num_classes

    # pred = net_ref(frame 0), pred_update = net_update(frame t-1) -> 1/8-res logits
    pred_raw = patch_conv_nchw(im_seg_list[:, :, 0], 8, params["ref_w"], params["ref_b"])
    upd_raw = patch_conv_nchw(im_seg_list[:, :, -1], 8, params["upd_w"], params["upd_b"])

    # both x2 bilinear upsamples batched into a single pallas_call
    both = jnp.concatenate([pred_raw, upd_raw], axis=0)          # (2n, h/8, w/8, CPAD)
    both = upsample_bilinear_nhwc(both, 2)                       # (2n, h/4, w/4, CPAD)
    pred, pred_update = both[:n], both[n:]

    # FlowNets stand-in for all t-1 frame pairs, batched into ONE matmul
    pairs = jnp.concatenate(
        [im_flow_list[:, :, 1:], im_flow_list[:, :, :-1]], axis=1
    )                                                            # (n, 2c, t-1, h, w)
    pairs = jnp.moveaxis(pairs, 2, 0).reshape((t - 1) * n, 2 * c, h, w)
    flows = patch_conv_nchw(pairs, 4, params["flow_w"], params["flow_b"])
    flows = flows[..., :2].reshape(t - 1, n, h // 4, w // 4, 2)  # real 2-ch flow
    # TODO(synk): no flow-magnitude rescaling (stand-in flow is already 1/4-res)

    # propagate prediction along the flow chain (gather tables precomputed once)
    i00, i01, i10, i11, fx, fy = _warp_gather_tables(flows, h // 4, w // 4)
    for i in range(t - 1):
        pred = _warp_step(pred, i00[i], i01[i], i10[i], i11[i], fx[i], fy[i])

    # merge 1x1 conv over concatenated (channel-padded) channels
    cat = jnp.concatenate([pred, pred_update], axis=-1)          # (n, h/4, w/4, 2*CPAD)
    N_, Hq, Wq, Cc = cat.shape
    merged = matmul_bias(
        cat.reshape(N_ * Hq * Wq, Cc), params["merge_w"], params["merge_b"]
    ).reshape(N_, Hq, Wq, -1)

    # drop lane padding before the big full-resolution upsample (saves ~8x HBM traffic)
    merged = merged[..., :nc]

    # x4 bilinear upsample to full resolution
    out = upsample_bilinear_nhwc(merged, 4)                      # (n, h, w, nc)
    return jnp.transpose(out, (0, 3, 1, 2))                      # NCHW, like PyTorch


# ----------------------------------------------------------------------------
if __name__ == "__main__":
    key = jax.random.PRNGKey(0)
    k_param, k_seg, k_flow = jax.random.split(key, 3)

    num_classes = 15
    n, c, t, h, w = 2, 3, 3, 32, 32
    params = init_params(k_param, num_classes=num_classes, img_ch=c)

    im_seg_list = jax.random.normal(k_seg, (n, c, t, h, w), jnp.float32)
    im_flow_list = jax.random.normal(k_flow, (n, c, t, h, w), jnp.float32)

    fwd = jax.jit(accel101_sfc_forward)
    pred_merge = jax.block_until_ready(fwd(params, im_seg_list, im_flow_list))

    assert pred_merge.shape == (n, num_classes, h, w), pred_merge.shape
    assert bool(jnp.all(jnp.isfinite(pred_merge)))
    print("KERNEL_OK")
</pallas_src>

<mosaic_0001>
module attributes {stable_mosaic.version = 11 : i64} {
  func.func @_matmul_bias_kernel(%arg0: i32, %arg1: memref<256x96xbf16, #tpu.memory_space<vmem>>, %arg2: memref<96x128xbf16, #tpu.memory_space<vmem>>, %arg3: memref<1x128xf32, #tpu.memory_space<vmem>>, %arg4: memref<256x128xf32, #tpu.memory_space<vmem>>) attributes {dimension_semantics = [#tpu.dimension_semantics<parallel>], iteration_bounds = array<i64: 1>, scalar_prefetch = 0 : i64, scratch_operands = 0 : i64, tpu.core_type = #tpu.core_type<tc>, window_params = [{transform_indices = @transform_0, window_bounds = array<i64: 256, 96>}, {pipeline_mode = #tpu.pipeline_mode<synchronous>, transform_indices = @transform_1, window_bounds = array<i64: 96, 128>}, {pipeline_mode = #tpu.pipeline_mode<synchronous>, transform_indices = @transform_2, window_bounds = array<i64: 1, 128>}, {transform_indices = @transform_3, window_bounds = array<i64: 256, 128>}]} {
    %c0 = arith.constant 0 : index
    %c0_0 = arith.constant 0 : index
    %0 = vector.load %arg1[%c0, %c0_0] : memref<256x96xbf16, #tpu.memory_space<vmem>>, vector<256x96xbf16>
    %c0_1 = arith.constant 0 : index
    %c0_2 = arith.constant 0 : index
    %1 = vector.load %arg2[%c0_1, %c0_2] : memref<96x128xbf16, #tpu.memory_space<vmem>>, vector<96x128xbf16>
    %cst = arith.constant dense<0.000000e+00> : vector<256x128xf32>
    %2 = tpu.matmul %0, %1, %cst {dimension_numbers = #tpu.dot_dimension_numbers<[1], [0], [0], [1], [0, 0, 1, 1], [], []>} : vector<256x96xbf16>, vector<96x128xbf16>, vector<256x128xf32> -> vector<256x128xf32>
    %c0_3 = arith.constant 0 : index
    %c0_4 = arith.constant 0 : index
    %3 = vector.load %arg3[%c0_3, %c0_4] : memref<1x128xf32, #tpu.memory_space<vmem>>, vector<1x128xf32>
    %4 = vector.broadcast %3 : vector<1x128xf32> to vector<256x128xf32>
    %5 = arith.addf %2, %4 : vector<256x128xf32>
    %c0_5 = arith.constant 0 : index
    %c0_6 = arith.constant 0 : index
    %6 = vector.load %arg4[%c0_5, %c0_6] : memref<256x128xf32, #tpu.memory_space<vmem>>, vector<256x128xf32>
    tpu.vector_store %arg4[%c0_5, %c0_6], %5 {strides = array<i32>} : memref<256x128xf32, #tpu.memory_space<vmem>>, vector<256x128xf32>,
    return
  }
  func.func @transform_0(%arg0: i32) -> (i32, i32) {
    %c0_i32 = arith.constant 0 : i32
    %c0_i32_0 = arith.constant 0 : i32
    return %arg0, %c0_i32 : i32, i32
  }
  func.func @transform_1(%arg0: i32) -> (i32, i32) {
    %c0_i32 = arith.constant 0 : i32
    %c0_i32_0 = arith.constant 0 : i32
    %c0_i32_1 = arith.constant 0 : i32
    return %c0_i32, %c0_i32_0 : i32, i32
  }
  func.func @transform_2(%arg0: i32) -> (i32, i32) {
    %c0_i32 = arith.constant 0 : i32
    %c0_i32_0 = arith.constant 0 : i32
    %c0_i32_1 = arith.constant 0 : i32
    return %c0_i32, %c0_i32_0 : i32, i32
  }
  func.func @transform_3(%arg0: i32) -> (i32, i32) {
    %c0_i32 = arith.constant 0 : i32
    %c0_i32_0 = arith.constant 0 : i32
    return %arg0, %c0_i32 : i32, i32
  }
}

module attributes {stable_mosaic.version = 11 : i64} {
  func.func @_matmul_bias_kernel(%arg0: i32, %arg1: memref<32x192xbf16, #tpu.memory_space<vmem>>, %arg2: memref<192x128xbf16, #tpu.memory_space<vmem>>, %arg3: memref<1x128xf32, #tpu.memory_space<vmem>>, %arg4: memref<32x128xf32, #tpu.memory_space<vmem>>) attributes {dimension_semantics = [#tpu.dimension_semantics<parallel>], iteration_bounds = array<i64: 1>, scalar_prefetch = 0 : i64, scratch_operands = 0 : i64, tpu.core_type = #tpu.core_type<tc>, window_params = [{transform_indices = @transform_0, window_bounds = array<i64: 32, 192>}, {pipeline_mode = #tpu.pipeline_mode<synchronous>, transform_indices = @transform_1, window_bounds = array<i64: 192, 128>}, {pipeline_mode = #tpu.pipeline_mode<synchronous>, transform_indices = @transform_2, window_bounds = array<i64: 1, 128>}, {transform_indices = @transform_3, window_bounds = array<i64: 32, 128>}]} {
    %c0 = arith.constant 0 : index
    %c0_0 = arith.constant 0 : index
    %0 = vector.load %arg1[%c0, %c0_0] : memref<32x192xbf16, #tpu.memory_space<vmem>>, vector<32x192xbf16>
    %c0_1 = arith.constant 0 : index
    %c0_2 = arith.constant 0 : index
    %1 = vector.load %arg2[%c0_1, %c0_2] : memref<192x128xbf16, #tpu.memory_space<vmem>>, vector<192x128xbf16>
    %cst = arith.constant dense<0.000000e+00> : vector<32x128xf32>
    %2 = tpu.matmul %0, %1, %cst {dimension_numbers = #tpu.dot_dimension_numbers<[1], [0], [0], [1], [0, 0, 1, 1], [], []>} : vector<32x192xbf16>, vector<192x128xbf16>, vector<32x128xf32> -> vector<32x128xf32>
    %c0_3 = arith.constant 0 : index
    %c0_4 = arith.constant 0 : index
    %3 = vector.load %arg3[%c0_3, %c0_4] : memref<1x128xf32, #tpu.memory_space<vmem>>, vector<1x128xf32>
    %4 = vector.broadcast %3 : vector<1x128xf32> to vector<32x128xf32>
    %5 = arith.addf %2, %4 : vector<32x128xf32>
    %c0_5 = arith.constant 0 : index
    %c0_6 = arith.constant 0 : index
    %6 = vector.load %arg4[%c0_5, %c0_6] : memref<32x128xf32, #tpu.memory_space<vmem>>, vector<32x128xf32>
    tpu.vector_store %arg4[%c0_5, %c0_6], %5 {strides = array<i32>} : memref<32x128xf32, #tpu.memory_space<vmem>>, vector<32x128xf32>,
    return
  }
  func.func @transform_0(%arg0: i32) -> (i32, i32) {
    %c0_i32 = arith.constant 0 : i32
    %c0_i32_0 = arith.constant 0 : i32
    return %arg0, %c0_i32 : i32, i32
  }
  func.func @transform_1(%arg0: i32) -> (i32, i32) {
    %c0_i32 = arith.constant 0 : i32
    %c0_i32_0 = arith.constant 0 : i32
    %c0_i32_1 = arith.constant 0 : i32
    return %c0_i32, %c0_i32_0 : i32, i32
  }
  func.func @transform_2(%arg0: i32) -> (i32, i32) {
    %c0_i32 = arith.constant 0 : i32
    %c0_i32_0 = arith.constant 0 : i32
    %c0_i32_1 = arith.constant 0 : i32
    return %c0_i32, %c0_i32_0 : i32, i32
  }
  func.func @transform_3(%arg0: i32) -> (i32, i32) {
    %c0_i32 = arith.constant 0 : i32
    %c0_i32_0 = arith.constant 0 : i32
    return %arg0, %c0_i32 : i32, i32
  }
}

module attributes {stable_mosaic.version = 11 : i64} {
  func.func @kernel(%arg0: i32, %arg1: i32, %arg2: memref<1x1x4x128xf32, #tpu.memory_space<vmem>>, %arg3: memref<1x1x4x128xf32, #tpu.memory_space<vmem>>, %arg4: memref<1x1x4x128xf32, #tpu.memory_space<vmem>>, %arg5: memref<8x4xf32, #tpu.memory_space<vmem>>, %arg6: memref<1x2x8x128xf32, #tpu.memory_space<vmem>>) attributes {dimension_semantics = [#tpu.dimension_semantics<parallel>, #tpu.dimension_semantics<parallel>], iteration_bounds = array<i64: 4, 4>, scalar_prefetch = 0 : i64, scratch_operands = 0 : i64, tpu.core_type = #tpu.core_type<tc>, window_params = [{transform_indices = @transform_0, window_bounds = array<i64: 1, 1, 4, 128>}, {transform_indices = @transform_1, window_bounds = array<i64: 1, 1, 4, 128>}, {transform_indices = @transform_2, window_bounds = array<i64: 1, 1, 4, 128>}, {pipeline_mode = #tpu.pipeline_mode<synchronous>, transform_indices = @transform_3, window_bounds = array<i64: 8, 4>}, {transform_indices = @transform_4, window_bounds = array<i64: 1, 2, 8, 128>}]} {
    %c0 = arith.constant 0 : index
    %c0_0 = arith.constant 0 : index
    %c0_1 = arith.constant 0 : index
    %c0_2 = arith.constant 0 : index
    %0 = vector.load %arg2[%c0, %c0_0, %c0_1, %c0_2] : memref<1x1x4x128xf32, #tpu.memory_space<vmem>>, vector<1x1x4x128xf32>
    %1 = vector.shape_cast %0 : vector<1x1x4x128xf32> to vector<4x128xf32>
    %c0_3 = arith.constant 0 : index
    %c0_4 = arith.constant 0 : index
    %c0_5 = arith.constant 0 : index
    %c0_6 = arith.constant 0 : index
    %2 = vector.load %arg3[%c0_3, %c0_4, %c0_5, %c0_6] : memref<1x1x4x128xf32, #tpu.memory_space<vmem>>, vector<1x1x4x128xf32>
    %3 = vector.shape_cast %2 : vector<1x1x4x128xf32> to vector<4x128xf32>
    %c0_7 = arith.constant 0 : index
    %c0_8 = arith.constant 0 : index
    %c0_9 = arith.constant 0 : index
    %c0_10 = arith.constant 0 : index
    %4 = vector.load %arg4[%c0_7, %c0_8, %c0_9, %c0_10] : memref<1x1x4x128xf32, #tpu.memory_space<vmem>>, vector<1x1x4x128xf32>
    %5 = vector.shape_cast %4 : vector<1x1x4x128xf32> to vector<4x128xf32>
    %c0_11 = arith.constant 0 : index
    %c0_12 = arith.constant 0 : index
    %6 = vector.load %arg5[%c0_11, %c0_12] : memref<8x4xf32, #tpu.memory_space<vmem>>, vector<8x4xf32>
    %cst = arith.constant 2.500000e-01 : f32
    %7 = vector.broadcast %cst : f32 to vector<4x128xf32>
    %8 = arith.mulf %7, %1 : vector<4x128xf32>
    %cst_13 = arith.constant 7.500000e-01 : f32
    %9 = vector.broadcast %cst_13 : f32 to vector<4x128xf32>
    %10 = arith.mulf %9, %3 : vector<4x128xf32>
    %11 = arith.addf %8, %10 : vector<4x128xf32>
    %cst_14 = arith.constant dense<0.000000e+00> : vector<8x128xf32>
    %12 = tpu.matmul %6, %11, %cst_14 {dimension_numbers = #tpu.dot_dimension_numbers<[1], [0], [0], [1], [0, 0, 1, 1], [], []>} : vector<8x4xf32>, vector<4x128xf32>, vector<8x128xf32> -> vector<8x128xf32>
    %c0_15 = arith.constant 0 : index
    %c0_16 = arith.constant 0 : index
    %c0_17 = arith.constant 0 : index
    %c0_18 = arith.constant 0 : index
    %13 = vector.load %arg6[%c0_15, %c0_16, %c0_17, %c0_18] : memref<1x2x8x128xf32, #tpu.memory_space<vmem>>, vector<1x1x8x128xf32>
    %14 = vector.shape_cast %13 : vector<1x1x8x128xf32> to vector<8x128xf32>
    %15 = vector.shape_cast %12 : vector<8x128xf32> to vector<1x1x8x128xf32>
    tpu.vector_store %arg6[%c0_15, %c0_16, %c0_17, %c0_18], %15 {strides = array<i32>} : memref<1x2x8x128xf32, #tpu.memory_space<vmem>>, vector<1x1x8x128xf32>,
    %cst_19 = arith.constant 7.500000e-01 : f32
    %16 = vector.broadcast %cst_19 : f32 to vector<4x128xf32>
    %17 = arith.mulf %16, %3 : vector<4x128xf32>
    %cst_20 = arith.constant 2.500000e-01 : f32
    %18 = vector.broadcast %cst_20 : f32 to vector<4x128xf32>
    %19 = arith.mulf %18, %5 : vector<4x128xf32>
    %20 = arith.addf %17, %19 : vector<4x128xf32>
    %cst_21 = arith.constant dense<0.000000e+00> : vector<8x128xf32>
    %21 = tpu.matmul %6, %20, %cst_21 {dimension_numbers = #tpu.dot_dimension_numbers<[1], [0], [0], [1], [0, 0, 1, 1], [], []>} : vector<8x4xf32>, vector<4x128xf32>, vector<8x128xf32> -> vector<8x128xf32>
    %c0_22 = arith.constant 0 : index
    %c1 = arith.constant 1 : index
    %c0_23 = arith.constant 0 : index
    %c0_24 = arith.constant 0 : index
    %22 = vector.load %arg6[%c0_22, %c1, %c0_23, %c0_24] : memref<1x2x8x128xf32, #tpu.memory_space<vmem>>, vector<1x1x8x128xf32>
    %23 = vector.shape_cast %22 : vector<1x1x8x128xf32> to vector<8x128xf32>
    %24 = vector.shape_cast %21 : vector<8x128xf32> to vector<1x1x8x128xf32>
    tpu.vector_store %arg6[%c0_22, %c1, %c0_23, %c0_24], %24 {strides = array<i32>} : memref<1x2x8x128xf32, #tpu.memory_space<vmem>>, vector<1x1x8x128xf32>,
    return
  }
  func.func @transform_0(%arg0: i32, %arg1: i32) -> (i32, i32, i32, i32) {
    %c1_i32 = arith.constant 1 : i32
    %0 = arith.subi %arg1, %c1_i32 : i32
    %c0_i32 = arith.constant 0 : i32
    %1 = arith.maxsi %0, %c0_i32 : i32
    %c0_i32_0 = arith.constant 0 : i32
    %c0_i32_1 = arith.constant 0 : i32
    %c0_i32_2 = arith.constant 0 : i32
    return %arg0, %1, %c0_i32_0, %c0_i32_1 : i32, i32, i32, i32
  }
  func.func @transform_1(%arg0: i32, %arg1: i32) -> (i32, i32, i32, i32) {
    %c0_i32 = arith.constant 0 : i32
    %c0_i32_0 = arith.constant 0 : i32
    %c0_i32_1 = arith.constant 0 : i32
    return %arg0, %arg1, %c0_i32, %c0_i32_0 : i32, i32, i32, i32
  }
  func.func @transform_2(%arg0: i32, %arg1: i32) -> (i32, i32, i32, i32) {
    %c1_i32 = arith.constant 1 : i32
    %0 = arith.addi %arg1, %c1_i32 : i32
    %c3_i32 = arith.constant 3 : i32
    %1 = arith.minsi %0, %c3_i32 : i32
    %c0_i32 = arith.constant 0 : i32
    %c0_i32_0 = arith.constant 0 : i32
    %c0_i32_1 = arith.constant 0 : i32
    return %arg0, %1, %c0_i32, %c0_i32_0 : i32, i32, i32, i32
  }
  func.func @transform_3(%arg0: i32, %arg1: i32) -> (i32, i32) {
    %c0_i32 = arith.constant 0 : i32
    %c0_i32_0 = arith.constant 0 : i32
    %c0_i32_1 = arith.constant 0 : i32
    return %c0_i32, %c0_i32_0 : i32, i32
  }
  func.func @transform_4(%arg0: i32, %arg1: i32) -> (i32, i32, i32, i32) {
    %c0_i32 = arith.constant 0 : i32
    %c0_i32_0 = arith.constant 0 : i32
    %c0_i32_1 = arith.constant 0 : i32
    return %arg0, %arg1, %c0_i32, %c0_i32_0 : i32, i32, i32, i32
  }
}

module attributes {stable_mosaic.version = 11 : i64} {
  func.func @_warp_blend_kernel(%arg0: i32, %arg1: memref<128x128xf32, #tpu.memory_space<vmem>>, %arg2: memref<128x128xf32, #tpu.memory_space<vmem>>, %arg3: memref<128x128xf32, #tpu.memory_space<vmem>>, %arg4: memref<128x128xf32, #tpu.memory_space<vmem>>, %arg5: memref<128x1xf32, #tpu.memory_space<vmem>>, %arg6: memref<128x1xf32, #tpu.memory_space<vmem>>, %arg7: memref<128x128xf32, #tpu.memory_space<vmem>>) attributes {dimension_semantics = [#tpu.dimension_semantics<parallel>], iteration_bounds = array<i64: 1>, scalar_prefetch = 0 : i64, scratch_operands = 0 : i64, tpu.core_type = #tpu.core_type<tc>, window_params = [{transform_indices = @transform_0, window_bounds = array<i64: 128, 128>}, {transform_indices = @transform_1, window_bounds = array<i64: 128, 128>}, {transform_indices = @transform_2, window_bounds = array<i64: 128, 128>}, {transform_indices = @transform_3, window_bounds = array<i64: 128, 128>}, {transform_indices = @transform_4, window_bounds = array<i64: 128, 1>}, {transform_indices = @transform_5, window_bounds = array<i64: 128, 1>}, {transform_indices = @transform_6, window_bounds = array<i64: 128, 128>}]} {
    %c0 = arith.constant 0 : index
    %c0_0 = arith.constant 0 : index
    %0 = vector.load %arg5[%c0, %c0_0] : memref<128x1xf32, #tpu.memory_space<vmem>>, vector<128x1xf32>
    %c0_1 = arith.constant 0 : index
    %c0_2 = arith.constant 0 : index
    %1 = vector.load %arg6[%c0_1, %c0_2] : memref<128x1xf32, #tpu.memory_space<vmem>>, vector<128x1xf32>
    %cst = arith.constant 1.000000e+00 : f32
    %2 = vector.broadcast %cst : f32 to vector<128x1xf32>
    %3 = arith.subf %2, %1 : vector<128x1xf32>
    %cst_3 = arith.constant 1.000000e+00 : f32
    %4 = vector.broadcast %cst_3 : f32 to vector<128x1xf32>
    %5 = arith.subf %4, %0 : vector<128x1xf32>
    %6 = arith.mulf %3, %5 : vector<128x1xf32>
    %cst_4 = arith.constant 1.000000e+00 : f32
    %7 = vector.broadcast %cst_4 : f32 to vector<128x1xf32>
    %8 = arith.subf %7, %1 : vector<128x1xf32>
    %9 = arith.mulf %8, %0 : vector<128x1xf32>
    %cst_5 = arith.constant 1.000000e+00 : f32
    %10 = vector.broadcast %cst_5 : f32 to vector<128x1xf32>
    %11 = arith.subf %10, %0 : vector<128x1xf32>
    %12 = arith.mulf %1, %11 : vector<128x1xf32>
    %13 = arith.mulf %1, %0 : vector<128x1xf32>
    %c0_6 = arith.constant 0 : index
    %c0_7 = arith.constant 0 : index
    %14 = vector.load %arg1[%c0_6, %c0_7] : memref<128x128xf32, #tpu.memory_space<vmem>>, vector<128x128xf32>
    %15 = vector.broadcast %6 : vector<128x1xf32> to vector<128x128xf32>
    %16 = arith.mulf %14, %15 : vector<128x128xf32>
    %c0_8 = arith.constant 0 : index
    %c0_9 = arith.constant 0 : index
    %17 = vector.load %arg2[%c0_8, %c0_9] : memref<128x128xf32, #tpu.memory_space<vmem>>, vector<128x128xf32>
    %18 = vector.broadcast %9 : vector<128x1xf32> to vector<128x128xf32>
    %19 = arith.mulf %17, %18 : vector<128x128xf32>
    %20 = arith.addf %16, %19 : vector<128x128xf32>
    %c0_10 = arith.constant 0 : index
    %c0_11 = arith.constant 0 : index
    %21 = vector.load %arg3[%c0_10, %c0_11] : memref<128x128xf32, #tpu.memory_space<vmem>>, vector<128x128xf32>
    %22 = vector.broadcast %12 : vector<128x1xf32> to vector<128x128xf32>
    %23 = arith.mulf %21, %22 : vector<128x128xf32>
    %24 = arith.addf %20, %23 : vector<128x128xf32>
    %c0_12 = arith.constant 0 : index
    %c0_13 = arith.constant 0 : index
    %25 = vector.load %arg4[%c0_12, %c0_13] : memref<128x128xf32, #tpu.memory_space<vmem>>, vector<128x128xf32>
    %26 = vector.broadcast %13 : vector<128x1xf32> to vector<128x128xf32>
    %27 = arith.mulf %25, %26 : vector<128x128xf32>
    %28 = arith.addf %24, %27 : vector<128x128xf32>
    %c0_14 = arith.constant 0 : index
    %c0_15 = arith.constant 0 : index
    %29 = vector.load %arg7[%c0_14, %c0_15] : memref<128x128xf32, #tpu.memory_space<vmem>>, vector<128x128xf32>
    tpu.vector_store %arg7[%c0_14, %c0_15], %28 {strides = array<i32>} : memref<128x128xf32, #tpu.memory_space<vmem>>, vector<128x128xf32>,
    return
  }
  func.func @transform_0(%arg0: i32) -> (i32, i32) {
    %c0_i32 = arith.constant 0 : i32
    %c0_i32_0 = arith.constant 0 : i32
    return %arg0, %c0_i32 : i32, i32
  }
  func.func @transform_1(%arg0: i32) -> (i32, i32) {
    %c0_i32 = arith.constant 0 : i32
    %c0_i32_0 = arith.constant 0 : i32
    return %arg0, %c0_i32 : i32, i32
  }
  func.func @transform_2(%arg0: i32) -> (i32, i32) {
    %c0_i32 = arith.constant 0 : i32
    %c0_i32_0 = arith.constant 0 : i32
    return %arg0, %c0_i32 : i32, i32
  }
  func.func @transform_3(%arg0: i32) -> (i32, i32) {
    %c0_i32 = arith.constant 0 : i32
    %c0_i32_0 = arith.constant 0 : i32
    return %arg0, %c0_i32 : i32, i32
  }
  func.func @transform_4(%arg0: i32) -> (i32, i32) {
    %c0_i32 = arith.constant 0 : i32
    %c0_i32_0 = arith.constant 0 : i32
    return %arg0, %c0_i32 : i32, i32
  }
  func.func @transform_5(%arg0: i32) -> (i32, i32) {
    %c0_i32 = arith.constant 0 : i32
    %c0_i32_0 = arith.constant 0 : i32
    return %arg0, %c0_i32 : i32, i32
  }
  func.func @transform_6(%arg0: i32) -> (i32, i32) {
    %c0_i32 = arith.constant 0 : i32
    %c0_i32_0 = arith.constant 0 : i32
    return %arg0, %c0_i32 : i32, i32
  }
}

module attributes {stable_mosaic.version = 11 : i64} {
  func.func @_matmul_bias_kernel(%arg0: i32, %arg1: memref<128x256xbf16, #tpu.memory_space<vmem>>, %arg2: memref<256x128xbf16, #tpu.memory_space<vmem>>, %arg3: memref<1x128xf32, #tpu.memory_space<vmem>>, %arg4: memref<128x128xf32, #tpu.memory_space<vmem>>) attributes {dimension_semantics = [#tpu.dimension_semantics<parallel>], iteration_bounds = array<i64: 1>, scalar_prefetch = 0 : i64, scratch_operands = 0 : i64, tpu.core_type = #tpu.core_type<tc>, window_params = [{transform_indices = @transform_0, window_bounds = array<i64: 128, 256>}, {pipeline_mode = #tpu.pipeline_mode<synchronous>, transform_indices = @transform_1, window_bounds = array<i64: 256, 128>}, {pipeline_mode = #tpu.pipeline_mode<synchronous>, transform_indices = @transform_2, window_bounds = array<i64: 1, 128>}, {transform_indices = @transform_3, window_bounds = array<i64: 128, 128>}]} {
    %c0 = arith.constant 0 : index
    %c0_0 = arith.constant 0 : index
    %0 = vector.load %arg1[%c0, %c0_0] : memref<128x256xbf16, #tpu.memory_space<vmem>>, vector<128x256xbf16>
    %c0_1 = arith.constant 0 : index
    %c0_2 = arith.constant 0 : index
    %1 = vector.load %arg2[%c0_1, %c0_2] : memref<256x128xbf16, #tpu.memory_space<vmem>>, vector<256x128xbf16>
    %cst = arith.constant dense<0.000000e+00> : vector<128x128xf32>
    %2 = tpu.matmul %0, %1, %cst {dimension_numbers = #tpu.dot_dimension_numbers<[1], [0], [0], [1], [0, 0, 1, 1], [], []>} : vector<128x256xbf16>, vector<256x128xbf16>, vector<128x128xf32> -> vector<128x128xf32>
    %c0_3 = arith.constant 0 : index
    %c0_4 = arith.constant 0 : index
    %3 = vector.load %arg3[%c0_3, %c0_4] : memref<1x128xf32, #tpu.memory_space<vmem>>, vector<1x128xf32>
    %4 = vector.broadcast %3 : vector<1x128xf32> to vector<128x128xf32>
    %5 = arith.addf %2, %4 : vector<128x128xf32>
    %c0_5 = arith.constant 0 : index
    %c0_6 = arith.constant 0 : index
    %6 = vector.load %arg4[%c0_5, %c0_6] : memref<128x128xf32, #tpu.memory_space<vmem>>, vector<128x128xf32>
    tpu.vector_store %arg4[%c0_5, %c0_6], %5 {strides = array<i32>} : memref<128x128xf32, #tpu.memory_space<vmem>>, vector<128x128xf32>,
    return
  }
  func.func @transform_0(%arg0: i32) -> (i32, i32) {
    %c0_i32 = arith.constant 0 : i32
    %c0_i32_0 = arith.constant 0 : i32
    return %arg0, %c0_i32 : i32, i32
  }
  func.func @transform_1(%arg0: i32) -> (i32, i32) {
    %c0_i32 = arith.constant 0 : i32
    %c0_i32_0 = arith.constant 0 : i32
    %c0_i32_1 = arith.constant 0 : i32
    return %c0_i32, %c0_i32_0 : i32, i32
  }
  func.func @transform_2(%arg0: i32) -> (i32, i32) {
    %c0_i32 = arith.constant 0 : i32
    %c0_i32_0 = arith.constant 0 : i32
    %c0_i32_1 = arith.constant 0 : i32
    return %c0_i32, %c0_i32_0 : i32, i32
  }
  func.func @transform_3(%arg0: i32) -> (i32, i32) {
    %c0_i32 = arith.constant 0 : i32
    %c0_i32_0 = arith.constant 0 : i32
    return %arg0, %c0_i32 : i32, i32
  }
}

module attributes {stable_mosaic.version = 11 : i64} {
  func.func @kernel(%arg0: i32, %arg1: i32, %arg2: memref<1x1x8x15xf32, #tpu.memory_space<vmem>>, %arg3: memref<1x1x8x15xf32, #tpu.memory_space<vmem>>, %arg4: memref<1x1x8x15xf32, #tpu.memory_space<vmem>>, %arg5: memref<32x8xf32, #tpu.memory_space<vmem>>, %arg6: memref<1x4x32x15xf32, #tpu.memory_space<vmem>>) attributes {dimension_semantics = [#tpu.dimension_semantics<parallel>, #tpu.dimension_semantics<parallel>], iteration_bounds = array<i64: 2, 8>, scalar_prefetch = 0 : i64, scratch_operands = 0 : i64, tpu.core_type = #tpu.core_type<tc>, window_params = [{transform_indices = @transform_0, window_bounds = array<i64: 1, 1, 8, 15>}, {transform_indices = @transform_1, window_bounds = array<i64: 1, 1, 8, 15>}, {transform_indices = @transform_2, window_bounds = array<i64: 1, 1, 8, 15>}, {pipeline_mode = #tpu.pipeline_mode<synchronous>, transform_indices = @transform_3, window_bounds = array<i64: 32, 8>}, {transform_indices = @transform_4, window_bounds = array<i64: 1, 4, 32, 15>}]} {
    %c0 = arith.constant 0 : index
    %c0_0 = arith.constant 0 : index
    %c0_1 = arith.constant 0 : index
    %c0_2 = arith.constant 0 : index
    %0 = vector.load %arg2[%c0, %c0_0, %c0_1, %c0_2] : memref<1x1x8x15xf32, #tpu.memory_space<vmem>>, vector<1x1x8x15xf32>
    %1 = vector.shape_cast %0 : vector<1x1x8x15xf32> to vector<8x15xf32>
    %c0_3 = arith.constant 0 : index
    %c0_4 = arith.constant 0 : index
    %c0_5 = arith.constant 0 : index
    %c0_6 = arith.constant 0 : index
    %2 = vector.load %arg3[%c0_3, %c0_4, %c0_5, %c0_6] : memref<1x1x8x15xf32, #tpu.memory_space<vmem>>, vector<1x1x8x15xf32>
    %3 = vector.shape_cast %2 : vector<1x1x8x15xf32> to vector<8x15xf32>
    %c0_7 = arith.constant 0 : index
    %c0_8 = arith.constant 0 : index
    %c0_9 = arith.constant 0 : index
    %c0_10 = arith.constant 0 : index
    %4 = vector.load %arg4[%c0_7, %c0_8, %c0_9, %c0_10] : memref<1x1x8x15xf32, #tpu.memory_space<vmem>>, vector<1x1x8x15xf32>
    %5 = vector.shape_cast %4 : vector<1x1x8x15xf32> to vector<8x15xf32>
    %c0_11 = arith.constant 0 : index
    %c0_12 = arith.constant 0 : index
    %6 = vector.load %arg5[%c0_11, %c0_12] : memref<32x8xf32, #tpu.memory_space<vmem>>, vector<32x8xf32>
    %cst = arith.constant 3.750000e-01 : f32
    %7 = vector.broadcast %cst : f32 to vector<8x15xf32>
    %8 = arith.mulf %7, %1 : vector<8x15xf32>
    %cst_13 = arith.constant 6.250000e-01 : f32
    %9 = vector.broadcast %cst_13 : f32 to vector<8x15xf32>
    %10 = arith.mulf %9, %3 : vector<8x15xf32>
    %11 = arith.addf %8, %10 : vector<8x15xf32>
    %cst_14 = arith.constant dense<0.000000e+00> : vector<32x15xf32>
    %12 = tpu.matmul %6, %11, %cst_14 {dimension_numbers = #tpu.dot_dimension_numbers<[1], [0], [0], [1], [0, 0, 1, 1], [], []>} : vector<32x8xf32>, vector<8x15xf32>, vector<32x15xf32> -> vector<32x15xf32>
    %c0_15 = arith.constant 0 : index
    %c0_16 = arith.constant 0 : index
    %c0_17 = arith.constant 0 : index
    %c0_18 = arith.constant 0 : index
    %13 = vector.load %arg6[%c0_15, %c0_16, %c0_17, %c0_18] : memref<1x4x32x15xf32, #tpu.memory_space<vmem>>, vector<1x1x32x15xf32>
    %14 = vector.shape_cast %13 : vector<1x1x32x15xf32> to vector<32x15xf32>
    %15 = vector.shape_cast %12 : vector<32x15xf32> to vector<1x1x32x15xf32>
    tpu.vector_store %arg6[%c0_15, %c0_16, %c0_17, %c0_18], %15 {strides = array<i32>} : memref<1x4x32x15xf32, #tpu.memory_space<vmem>>, vector<1x1x32x15xf32>,
    %cst_19 = arith.constant 1.250000e-01 : f32
    %16 = vector.broadcast %cst_19 : f32 to vector<8x15xf32>
    %17 = arith.mulf %16, %1 : vector<8x15xf32>
    %cst_20 = arith.constant 8.750000e-01 : f32
    %18 = vector.broadcast %cst_20 : f32 to vector<8x15xf32>
    %19 = arith.mulf %18, %3 : vector<8x15xf32>
    %20 = arith.addf %17, %19 : vector<8x15xf32>
    %cst_21 = arith.constant dense<0.000000e+00> : vector<32x15xf32>
    %21 = tpu.matmul %6, %20, %cst_21 {dimension_numbers = #tpu.dot_dimension_numbers<[1], [0], [0], [1], [0, 0, 1, 1], [], []>} : vector<32x8xf32>, vector<8x15xf32>, vector<32x15xf32> -> vector<32x15xf32>
    %c0_22 = arith.constant 0 : index
    %c1 = arith.constant 1 : index
    %c0_23 = arith.constant 0 : index
    %c0_24 = arith.constant 0 : index
    %22 = vector.load %arg6[%c0_22, %c1, %c0_23, %c0_24] : memref<1x4x32x15xf32, #tpu.memory_space<vmem>>, vector<1x1x32x15xf32>
    %23 = vector.shape_cast %22 : vector<1x1x32x15xf32> to vector<32x15xf32>
    %24 = vector.shape_cast %21 : vector<32x15xf32> to vector<1x1x32x15xf32>
    tpu.vector_store %arg6[%c0_22, %c1, %c0_23, %c0_24], %24 {strides = array<i32>} : memref<1x4x32x15xf32, #tpu.memory_space<vmem>>, vector<1x1x32x15xf32>,
    %cst_25 = arith.constant 8.750000e-01 : f32
    %25 = vector.broadcast %cst_25 : f32 to vector<8x15xf32>
    %26 = arith.mulf %25, %3 : vector<8x15xf32>
    %cst_26 = arith.constant 1.250000e-01 : f32
    %27 = vector.broadcast %cst_26 : f32 to vector<8x15xf32>
    %28 = arith.mulf %27, %5 : vector<8x15xf32>
    %29 = arith.addf %26, %28 : vector<8x15xf32>
    %cst_27 = arith.constant dense<0.000000e+00> : vector<32x15xf32>
    %30 = tpu.matmul %6, %29, %cst_27 {dimension_numbers = #tpu.dot_dimension_numbers<[1], [0], [0], [1], [0, 0, 1, 1], [], []>} : vector<32x8xf32>, vector<8x15xf32>, vector<32x15xf32> -> vector<32x15xf32>
    %c0_28 = arith.constant 0 : index
    %c2 = arith.constant 2 : index
    %c0_29 = arith.constant 0 : index
    %c0_30 = arith.constant 0 : index
    %31 = vector.load %arg6[%c0_28, %c2, %c0_29, %c0_30] : memref<1x4x32x15xf32, #tpu.memory_space<vmem>>, vector<1x1x32x15xf32>
    %32 = vector.shape_cast %31 : vector<1x1x32x15xf32> to vector<32x15xf32>
    %33 = vector.shape_cast %30 : vector<32x15xf32> to vector<1x1x32x15xf32>
    tpu.vector_store %arg6[%c0_28, %c2, %c0_29, %c0_30], %33 {strides = array<i32>} : memref<1x4x32x15xf32, #tpu.memory_space<vmem>>, vector<1x1x32x15xf32>,
    %cst_31 = arith.constant 6.250000e-01 : f32
    %34 = vector.broadcast %cst_31 : f32 to vector<8x15xf32>
    %35 = arith.mulf %34, %3 : vector<8x15xf32>
    %cst_32 = arith.constant 3.750000e-01 : f32
    %36 = vector.broadcast %cst_32 : f32 to vector<8x15xf32>
    %37 = arith.mulf %36, %5 : vector<8x15xf32>
    %38 = arith.addf %35, %37 : vector<8x15xf32>
    %cst_33 = arith.constant dense<0.000000e+00> : vector<32x15xf32>
    %39 = tpu.matmul %6, %38, %cst_33 {dimension_numbers = #tpu.dot_dimension_numbers<[1], [0], [0], [1], [0, 0, 1, 1], [], []>} : vector<32x8xf32>, vector<8x15xf32>, vector<32x15xf32> -> vector<32x15xf32>
    %c0_34 = arith.constant 0 : index
    %c3 = arith.constant 3 : index
    %c0_35 = arith.constant 0 : index
    %c0_36 = arith.constant 0 : index
    %40 = vector.load %arg6[%c0_34, %c3, %c0_35, %c0_36] : memref<1x4x32x15xf32, #tpu.memory_space<vmem>>, vector<1x1x32x15xf32>
    %41 = vector.shape_cast %40 : vector<1x1x32x15xf32> to vector<32x15xf32>
    %42 = vector.shape_cast %39 : vector<32x15xf32> to vector<1x1x32x15xf32>
    tpu.vector_store %arg6[%c0_34, %c3, %c0_35, %c0_36], %42 {strides = array<i32>} : memref<1x4x32x15xf32, #tpu.memory_space<vmem>>, vector<1x1x32x15xf32>,
    return
  }
  func.func @transform_0(%arg0: i32, %arg1: i32) -> (i32, i32, i32, i32) {
    %c1_i32 = arith.constant 1 : i32
    %0 = arith.subi %arg1, %c1_i32 : i32
    %c0_i32 = arith.constant 0 : i32
    %1 = arith.maxsi %0, %c0_i32 : i32
    %c0_i32_0 = arith.constant 0 : i32
    %c0_i32_1 = arith.constant 0 : i32
    %c0_i32_2 = arith.constant 0 : i32
    return %arg0, %1, %c0_i32_0, %c0_i32_1 : i32, i32, i32, i32
  }
  func.func @transform_1(%arg0: i32, %arg1: i32) -> (i32, i32, i32, i32) {
    %c0_i32 = arith.constant 0 : i32
    %c0_i32_0 = arith.constant 0 : i32
    %c0_i32_1 = arith.constant 0 : i32
    return %arg0, %arg1, %c0_i32, %c0_i32_0 : i32, i32, i32, i32
  }
  func.func @transform_2(%arg0: i32, %arg1: i32) -> (i32, i32, i32, i32) {
    %c1_i32 = arith.constant 1 : i32
    %0 = arith.addi %arg1, %c1_i32 : i32
    %c7_i32 = arith.constant 7 : i32
    %1 = arith.minsi %0, %c7_i32 : i32
    %c0_i32 = arith.constant 0 : i32
    %c0_i32_0 = arith.constant 0 : i32
    %c0_i32_1 = arith.constant 0 : i32
    return %arg0, %1, %c0_i32, %c0_i32_0 : i32, i32, i32, i32
  }
  func.func @transform_3(%arg0: i32, %arg1: i32) -> (i32, i32) {
    %c0_i32 = arith.constant 0 : i32
    %c0_i32_0 = arith.constant 0 : i32
    %c0_i32_1 = arith.constant 0 : i32
    return %c0_i32, %c0_i32_0 : i32, i32
  }
  func.func @transform_4(%arg0: i32, %arg1: i32) -> (i32, i32, i32, i32) {
    %c0_i32 = arith.constant 0 : i32
    %c0_i32_0 = arith.constant 0 : i32
    %c0_i32_1 = arith.constant 0 : i32
    return %arg0, %arg1, %c0_i32, %c0_i32_0 : i32, i32, i32, i32
  }
}

</mosaic_0001>

<bundles_post_ra>
// kernel: accel101_sfc_forward.11
= control target key start
LH: loop header
LB: loop body
LE: loop exit
PB: predicated region body
PF: predicated region fallthrough
CT: control target
= control target key end

     0   :  { %vm182_vm0 = vcmask 785408   ;;  %s802_s1 = inlined_call_operand.vmem [shape: bf16[96,128], index: 1, kind: input, shape index: {}]   ;;  %s803_s0 = inlined_call_operand.vmem [shape: bf16[256,96], index: 0, kind: input, shape index: {}]   ;;  %s804_s2 = inlined_call_operand.vmem [shape: f32[1,128], index: 2, kind: input, shape index: {}]   ;;  %s805_s3 = inlined_call_operand.vmem [shape: f32[256,128], index: 3, kind: output, shape index: {}]  }
   0x1   :  { %v545_v0 = vld [vmem:[%s802_s1 + $0x28] sm:$0xff]   ;;  %v546_v1 = vld [vmem:[%s802_s1 + $0x20] sm:$0xff]   ;;  %v547_v2 = vld [vmem:[%s802_s1 + $0x18] sm:$0xff]  }
   0x2   :  { %489 = vmatprep.subr.bf16.mxu0 %v545_v0  ;;  %533 = vmatprep.subr.bf16.mxu1 %v545_v0  ;;  %v551_v3 = vld [vmem:[%s803_s0] sm:$0xff]   ;;  %v548_v5 = vld [vmem:[%s802_s1 + $0x10] sm:$0xff]   ;;  %v549_v6 = vld [vmem:[%s802_s1 + $0x8] sm:$0xff]  }
   0x3   :  { %490 = vmatpush3.bf16.msra.mxu0 %v545_v0  ;;  %539 = vmatpush3.bf16.msra.mxu1 %v545_v0  ;;  %v552_v4 = vld [vmem:[%s803_s0 + $0x40] sm:$0xff]   ;;  %v553_v8 = vld [vmem:[%s803_s0 + $0x8] sm:$0xff]   ;;  %v555_v10 = vld [vmem:[%s803_s0 + $0x10] sm:$0xff]  }
   0x4   :  { %491 = vmatprep.subr.bf16.mxu0 %v546_v1  ;;  %534 = vmatprep.subr.bf16.mxu1 %v546_v1  ;;  %v550_v7 = vld [vmem:[%s802_s1] sm:$0xff]   ;;  %v554_v9 = vld [vmem:[%s803_s0 + $0x48] sm:$0xff]   ;;  %v556_v11 = vld [vmem:[%s803_s0 + $0x50] sm:$0xff]  }
   0x5   :  { %501 = vmatprep.mubr.msk.bf16.mxu0 %vm182_vm0, %v551_v3  ;;  %517 = vmatprep.mubr.msk.bf16.mxu1 %vm182_vm0, %v552_v4  ;;  %v557_v12 = vld [vmem:[%s803_s0 + $0x18] sm:$0xff]   ;;  %v559_v14 = vld [vmem:[%s803_s0 + $0x20] sm:$0xff]   ;;  %v561_v16 = vld [vmem:[%s803_s0 + $0x28] sm:$0xff]  }
   0x6   :  { %v558_v13 = vld [vmem:[%s803_s0 + $0x58] sm:$0xff]   ;;  %v560_v15 = vld [vmem:[%s803_s0 + $0x60] sm:$0xff]   ;;  %v562_v17 = vld [vmem:[%s803_s0 + $0x68] sm:$0xff]  }
   0x7   :  { %492 = vmatpush3.bf16.msra.mxu0 %v546_v1  ;;  %540 = vmatpush3.bf16.msra.mxu1 %v546_v1  ;;  %v563_v18 = vld [vmem:[%s803_s0 + $0x30] sm:$0xff]   ;;  %v565_v20 = vld [vmem:[%s803_s0 + $0x38] sm:$0xff]   ;;  %v672_v22 = vld [vmem:[%s804_s2] ss:$0 sm:$0xff] }
   0x8   :  { %493 = vmatprep.subr.bf16.mxu0 %v547_v2  ;;  %535 = vmatprep.subr.bf16.mxu1 %v547_v2  ;;  %v564_v19 = vld [vmem:[%s803_s0 + $0x70] sm:$0xff]   ;;  %v566_v21 = vld [vmem:[%s803_s0 + $0x78] sm:$0xff]  }
   0xb   :  { %494 = vmatpush3.bf16.msra.mxu0 %v547_v2  ;;  %541 = vmatpush3.bf16.msra.mxu1 %v547_v2 }
   0xc   :  { %495 = vmatprep.subr.bf16.mxu0 %v548_v5  ;;  %536 = vmatprep.subr.bf16.mxu1 %v548_v5 }
   0xf   :  { %496 = vmatpush3.bf16.msra.mxu0 %v548_v5  ;;  %542 = vmatpush3.bf16.msra.mxu1 %v548_v5 }
  0x10   :  { %497 = vmatprep.subr.bf16.mxu0 %v549_v6  ;;  %537 = vmatprep.subr.bf16.mxu1 %v549_v6 }
  0x13   :  { %498 = vmatpush3.bf16.msra.mxu0 %v549_v6  ;;  %543 = vmatpush3.bf16.msra.mxu1 %v549_v6 }
  0x14   :  { %499 = vmatprep.subr.bf16.mxu0 %v550_v7  ;;  %538 = vmatprep.subr.bf16.mxu1 %v550_v7 }
  0x17   :  { %500 = vmatpush3.bf16.msra.mxu0 %v550_v7  ;;  %544 = vmatpush3.bf16.msra.mxu1 %v550_v7 }
  0x1a   :  { %502 = vmatmul.mubr.msk.bf16.vlgmr.msra.gmra.mxu0 %vm182_vm0, %v553_v8  ;;  %518 = vmatmul.mubr.msk.bf16.vlgmr.msra.gmra.mxu1 %vm182_vm0, %v554_v9 }
  0x1b   :  { %505 = vmatprep.mubr.msk.bf16.mxu0 %vm182_vm0, %v555_v10  ;;  %521 = vmatprep.mubr.msk.bf16.mxu1 %vm182_vm0, %v556_v11 }
  0x22   :  { %506 = vmatmul.mubr.msk.bf16.gmra.mxu0 %vm182_vm0, %v557_v12  ;;  %522 = vmatmul.mubr.msk.bf16.gmra.mxu1 %vm182_vm0, %v558_v13 }
  0x23   :  { %509 = vmatprep.mubr.msk.bf16.mxu0 %vm182_vm0, %v559_v14  ;;  %525 = vmatprep.mubr.msk.bf16.mxu1 %vm182_vm0, %v560_v15 }
  0x2a   :  { %510 = vmatmul.mubr.msk.bf16.gmra.mxu0 %vm182_vm0, %v561_v16  ;;  %526 = vmatmul.mubr.msk.bf16.gmra.mxu1 %vm182_vm0, %v562_v17 }
  0x2b   :  { %513 = vmatprep.mubr.msk.bf16.mxu0 %vm182_vm0, %v563_v18  ;;  %529 = vmatprep.mubr.msk.bf16.mxu1 %vm182_vm0, %v564_v19 }
  0x32   :  { %514 = vmatmul.mubr.msk.bf16.gmra.mxu0 %vm182_vm0, %v565_v20  ;;  %530 = vmatmul.mubr.msk.bf16.gmra.mxu1 %vm182_vm0, %v566_v21 }
  0xda   :  { %v503_v23 = vpop.f32.mrf.mxu0  ;;  %v519_v24 = vpop.f32.mrf.mxu1 }
  0xdb   :  { %v274_v25 = vadd.f32 %v503_v23, %v672_v22  ;;  %v338_v26 = vadd.f32 %v519_v24, %v672_v22 }
  0xdc   :  { %v265_v27 = vpop.f32.mrf.mxu0  ;;  %v329_v28 = vpop.f32.mrf.mxu1 }
  0xdd   :  { %394 = vst [vmem:[%s805_s3 + $0x10] sm:$0xff] %v274_v25  ;;  %410 = vst [vmem:[%s805_s3 + $0x90] sm:$0xff] %v338_v26  ;;  %v266_v29 = vadd.f32 %v672_v22, %v265_v27  ;;  %v330_v30 = vadd.f32 %v672_v22, %v329_v28 }
  0xde   :  { %v504_v31 = vpop.f32.mrf.mxu0  ;;  %v520_v32 = vpop.f32.mrf.mxu1 }
  0xdf   :  { %392 = vst [vmem:[%s805_s3] sm:$0xff] %v266_v29  ;;  %408 = vst [vmem:[%s805_s3 + $0x80] sm:$0xff] %v330_v30  ;;  %v277_v33 = vadd.f32 %v504_v31, %v672_v22  ;;  %v341_v34 = vadd.f32 %v520_v32, %v672_v22 }
  0xe0   :  { %v268_v35 = vpop.f32.mrf.mxu0  ;;  %v332_v36 = vpop.f32.mrf.mxu1 }
  0xe1   :  { %395 = vst [vmem:[%s805_s3 + $0x18] sm:$0xff] %v277_v33  ;;  %411 = vst [vmem:[%s805_s3 + $0x98] sm:$0xff] %v341_v34  ;;  %v269_v37 = vadd.f32 %v672_v22, %v268_v35  ;;  %v333_v38 = vadd.f32 %v672_v22, %v332_v36 }
  0xe2   :  { %v507_v39 = vpop.f32.mrf.mxu0  ;;  %v523_v40 = vpop.f32.mrf.mxu1 }
  0xe3   :  { %393 = vst [vmem:[%s805_s3 + $0x8] sm:$0xff] %v269_v37  ;;  %409 = vst [vmem:[%s805_s3 + $0x88] sm:$0xff] %v333_v38  ;;  %v290_v41 = vadd.f32 %v507_v39, %v672_v22  ;;  %v354_v42 = vadd.f32 %v523_v40, %v672_v22 }
  0xe4   :  { %v281_v43 = vpop.f32.mrf.mxu0  ;;  %v345_v44 = vpop.f32.mrf.mxu1 }
  0xe5   :  { %398 = vst [vmem:[%s805_s3 + $0x30] sm:$0xff] %v290_v41  ;;  %414 = vst [vmem:[%s805_s3 + $0xb0] sm:$0xff] %v354_v42  ;;  %v282_v45 = vadd.f32 %v672_v22, %v281_v43  ;;  %v346_v46 = vadd.f32 %v672_v22, %v345_v44 }
  0xe6   :  { %v508_v47 = vpop.f32.mrf.mxu0  ;;  %v524_v48 = vpop.f32.mrf.mxu1 }
  0xe7   :  { %396 = vst [vmem:[%s805_s3 + $0x20] sm:$0xff] %v282_v45  ;;  %412 = vst [vmem:[%s805_s3 + $0xa0] sm:$0xff] %v346_v46  ;;  %v293_v49 = vadd.f32 %v508_v47, %v672_v22  ;;  %v357_v50 = vadd.f32 %v524_v48, %v672_v22 }
  0xe8   :  { %v284_v51 = vpop.f32.mrf.mxu0  ;;  %v348_v52 = vpop.f32.mrf.mxu1 }
  0xe9   :  { %399 = vst [vmem:[%s805_s3 + $0x38] sm:$0xff] %v293_v49  ;;  %415 = vst [vmem:[%s805_s3 + $0xb8] sm:$0xff] %v357_v50  ;;  %v285_v53 = vadd.f32 %v672_v22, %v284_v51  ;;  %v349_v54 = vadd.f32 %v672_v22, %v348_v52 }
  0xea   :  { %v511_v55 = vpop.f32.mrf.mxu0  ;;  %v527_v56 = vpop.f32.mrf.mxu1 }
  0xeb   :  { %397 = vst [vmem:[%s805_s3 + $0x28] sm:$0xff] %v285_v53  ;;  %413 = vst [vmem:[%s805_s3 + $0xa8] sm:$0xff] %v349_v54  ;;  %v306_v57 = vadd.f32 %v511_v55, %v672_v22  ;;  %v370_v58 = vadd.f32 %v527_v56, %v672_v22 }
  0xec   :  { %v297_v59 = vpop.f32.mrf.mxu0  ;;  %v361_v60 = vpop.f32.mrf.mxu1 }
  0xed   :  { %402 = vst [vmem:[%s805_s3 + $0x50] sm:$0xff] %v306_v57  ;;  %418 = vst [vmem:[%s805_s3 + $0xd0] sm:$0xff] %v370_v58  ;;  %v298_v61 = vadd.f32 %v672_v22, %v297_v59  ;;  %v362_v62 = vadd.f32 %v672_v22, %v361_v60 }
  0xee   :  { %v512_v63 = vpop.f32.mrf.mxu0  ;;  %v528_v0 = vpop.f32.mrf.mxu1 }
  0xef   :  { %400 = vst [vmem:[%s805_s3 + $0x40] sm:$0xff] %v298_v61  ;;  %416 = vst [vmem:[%s805_s3 + $0xc0] sm:$0xff] %v362_v62  ;;  %v309_v1 = vadd.f32 %v512_v63, %v672_v22  ;;  %v373_v2 = vadd.f32 %v528_v0, %v672_v22 }
  0xf0   :  { %v300_v3 = vpop.f32.mrf.mxu0  ;;  %v364_v4 = vpop.f32.mrf.mxu1 }
  0xf1   :  { %403 = vst [vmem:[%s805_s3 + $0x58] sm:$0xff] %v309_v1  ;;  %419 = vst [vmem:[%s805_s3 + $0xd8] sm:$0xff] %v373_v2  ;;  %v301_v5 = vadd.f32 %v672_v22, %v300_v3  ;;  %v365_v6 = vadd.f32 %v672_v22, %v364_v4 }
  0xf2   :  { %v515_v7 = vpop.f32.mrf.mxu0  ;;  %v531_v8 = vpop.f32.mrf.mxu1 }
  0xf3   :  { %401 = vst [vmem:[%s805_s3 + $0x48] sm:$0xff] %v301_v5  ;;  %417 = vst [vmem:[%s805_s3 + $0xc8] sm:$0xff] %v365_v6  ;;  %v322_v9 = vadd.f32 %v515_v7, %v672_v22  ;;  %v386_v10 = vadd.f32 %v531_v8, %v672_v22 }
  0xf4   :  { %v313_v11 = vpop.f32.mrf.mxu0  ;;  %v377_v12 = vpop.f32.mrf.mxu1 }
  0xf5   :  { %406 = vst [vmem:[%s805_s3 + $0x70] sm:$0xff] %v322_v9  ;;  %422 = vst [vmem:[%s805_s3 + $0xf0] sm:$0xff] %v386_v10  ;;  %v314_v13 = vadd.f32 %v672_v22, %v313_v11  ;;  %v378_v14 = vadd.f32 %v672_v22, %v377_v12 }
  0xf6   :  { %v516_v15 = vpop.f32.mrf.mxu0  ;;  %v532_v16 = vpop.f32.mrf.mxu1 }
  0xf7   :  { %404 = vst [vmem:[%s805_s3 + $0x60] sm:$0xff] %v314_v13  ;;  %420 = vst [vmem:[%s805_s3 + $0xe0] sm:$0xff] %v378_v14  ;;  %v325_v17 = vadd.f32 %v516_v15, %v672_v22  ;;  %v389_v18 = vadd.f32 %v532_v16, %v672_v22 }
  0xf8   :  { %v316_v19 = vpop.f32.mrf.mxu0  ;;  %v380_v20 = vpop.f32.mrf.mxu1 }
  0xf9   :  { %407 = vst [vmem:[%s805_s3 + $0x78] sm:$0xff] %v325_v17  ;;  %423 = vst [vmem:[%s805_s3 + $0xf8] sm:$0xff] %v389_v18  ;;  %v317_v21 = vadd.f32 %v672_v22, %v316_v19  ;;  %v381_v23 = vadd.f32 %v672_v22, %v380_v20 }
  0xfb   :  { %405 = vst [vmem:[%s805_s3 + $0x68] sm:$0xff] %v317_v21  ;;  %421 = vst [vmem:[%s805_s3 + $0xe8] sm:$0xff] %v381_v23 }

// kernel: squeeze.23
= control target key start
LH: loop header
LB: loop body
LE: loop exit
PB: predicated region body
PF: predicated region fallthrough
CT: control target
= control target key end

     0   :  { %s7_s6 = smov 3  ;;  %s21_s9 = smov 3  ;;  %vm4_vm0 = vcmask 64512   ;;  %vm11_vm1 = vcmask 523712   ;;  %vm18_vm2 = vcmask 458112   ;;  %vm25_vm3 = vcmask 392512   ;;  %s121_s0 = inlined_call_operand.vmem [shape: s32[1,2,8,8], index: 0, kind: input, shape index: {}]   ;;  %s122_s1 = inlined_call_operand.vmem [shape: s32[2,64,1], index: 1, kind: output, shape index: {}]  }
   0x1   :  { %v63_v0 = vld [vmem:[%s121_s0 + $0x7] ss:$8 sm:%s7_s6]   ;;  %s77_s10 = smov 56   ;;  %v65_v1 = vld [vmem:[%s121_s0 + $0x5] ss:$8 sm:%s21_s9]   ;;  %s14_s13 = smov 3 }
   0x2   :  { %9 = vrot.lane.b32.xlu0 %v63_v0, %s77_s10  ;;  %s78_s14 = smov 40   ;;  %v64_v2 = vld [vmem:[%s121_s0 + $0x6] ss:$8 sm:%s14_s13]   ;;  %s28_s17 = smov 3  ;;  %vm32_vm4 = vcmask 326912   ;;  %vm39_vm5 = vcmask 261312  }
   0x3   :  { %23 = vrot.lane.b32.xlu1 %v65_v1, %s78_s14  ;;  %v66_v3 = vld [vmem:[%s121_s0 + $0x4] ss:$8 sm:%s28_s17]   ;;  %s35_s20 = smov 3  ;;  %s42_s21 = smov 3  ;;  %vm46_vm6 = vcmask 195712   ;;  %vm53_vm7 = vcmask 130112  }
   0x4   :  { %s79_s22 = smov 48   ;;  %s80_s23 = smov 32   ;;  %v67_v4 = vld [vmem:[%s121_s0 + $0x3] ss:$8 sm:%s35_s20]   ;;  %v68_v5 = vld [vmem:[%s121_s0 + $0x2] ss:$8 sm:%s42_s21]  }
   0x5   :  { %s2_s26 = smov 3  ;;  %s49_s29 = smov 3 }
   0x6   :  { %16 = vrot.lane.b32.xlu0 %v64_v2, %s79_s22  ;;  %v3_v6 = vld [vmem:[%s121_s0] ss:$8 sm:%s2_s26]   ;;  %s81_s3 = smov 24   ;;  %s82_s4 = smov 16  }
   0x7   :  { %30 = vrot.lane.b32.xlu1 %v66_v3, %s80_s23  ;;  %5 = vst.msk [vmem:[#allocation0] sm:$0x3] %vm4_vm0, %v3_v6   ;;  %v69_v7 = vld [vmem:[%s121_s0 + $0x1] ss:$8 sm:%s49_s29]   ;;  %s83_s0 = smov 8  }
   0xa   :  { %37 = vrot.lane.b32.xlu0 %v67_v4, %s81_s3 }
   0xb   :  { %44 = vrot.lane.b32.xlu1 %v68_v5, %s82_s4 }
   0xe   :  { %51 = vrot.lane.b32.xlu0 %v69_v7, %s83_s0 }
  0x74   :  { %v10_v8 = vpop.permute.xlu0 %9  }
  0x75   :  { %12 = vst.msk [vmem:[#allocation0] sm:$0x3] %vm11_vm1, %v10_v8   ;;  %v24_v9 = vpop.permute.xlu1 %23  }
  0x78   :  { %v17_v10 = vpop.permute.xlu0 %16  }
  0x79   :  { %19 = vst.msk [vmem:[#allocation0] sm:$0x3] %vm18_vm2, %v17_v10   ;;  %v31_v11 = vpop.permute.xlu1 %30  }
  0x7a   :  { %26 = vst.msk [vmem:[#allocation0] sm:$0x3] %vm25_vm3, %v24_v9  }
  0x7b   :  { %33 = vst.msk [vmem:[#allocation0] sm:$0x3] %vm32_vm4, %v31_v11  }
  0x7c   :  { %v38_v12 = vpop.permute.xlu0 %37  }
  0x7d   :  { %40 = vst.msk [vmem:[#allocation0] sm:$0x3] %vm39_vm5, %v38_v12   ;;  %v45_v13 = vpop.permute.xlu1 %44  }
  0x7e   :  { %47 = vst.msk [vmem:[#allocation0] sm:$0x3] %vm46_vm6, %v45_v13  }
  0x80   :  { %v52_v14 = vpop.permute.xlu0 %51  }
  0x81   :  { %54 = vst.msk [vmem:[#allocation0] sm:$0x3] %vm53_vm7, %v52_v14  }
  0x88   :  { %v59_v15 = vld [vmem:[#allocation0] sm:$0x3] }
  0x89   :  { %62 = vst [vmem:[%s122_s1] sm:$0x3] %v59_v15 }

// kernel: accel101_sfc_forward.8
= control target key start
LH: loop header
LB: loop body
LE: loop exit
PB: predicated region body
PF: predicated region fallthrough
CT: control target
= control target key end

     0   :  { %v266_v0 = vmov 0   ;;  %vm140_vm0 = vcmask 523264   ;;  %s374_s1 = inlined_call_operand.vmem [shape: bf16[192,128], index: 1, kind: input, shape index: {}]   ;;  %s375_s0 = inlined_call_operand.vmem [shape: bf16[32,192], index: 0, kind: input, shape index: {}]   ;;  %s376_s2 = inlined_call_operand.vmem [shape: f32[1,128], index: 2, kind: input, shape index: {}]   ;;  %s377_s3 = inlined_call_operand.vmem [shape: f32[32,128], index: 3, kind: output, shape index: {}]  }
   0x1   :  { %147 = vmatprep.subr.bf16.mxu0 %v266_v0  ;;  %223 = vmatprep.subr.bf16.mxu1 %v266_v0  ;;  %v248_v1 = vld [vmem:[%s374_s1 + $0x38] sm:$0xff]   ;;  %v249_v2 = vld [vmem:[%s374_s1 + $0x30] sm:$0xff]   ;;  %v250_v3 = vld [vmem:[%s374_s1 + $0x28] sm:$0xff]  }
   0x2   :  { %148 = vmatpush1.bf16.msra.mxu0 %v248_v1  ;;  %235 = vmatpush1.bf16.msra.mxu1 %v248_v1  ;;  %v251_v4 = vld [vmem:[%s374_s1 + $0x20] sm:$0xff]   ;;  %v252_v6 = vld [vmem:[%s374_s1 + $0x18] sm:$0xff]   ;;  %v253_v8 = vld [vmem:[%s374_s1 + $0x10] sm:$0xff]  }
   0x3   :  { %149 = vmatprep.subr.bf16.mxu0 %v266_v0  ;;  %224 = vmatprep.subr.bf16.mxu1 %v266_v0  ;;  %v262_v5 = vld [vmem:[%s375_s0 + $0x4] ss:$8 sps:$4 sm:$0xff]   ;;  %v265_v7 = vld [vmem:[%s375_s0 + $0x14] ss:$8 sps:$4 sm:$0xff]   ;;  %v260_v15 = vld [vmem:[%s375_s0] ss:$8 sps:$4 sm:$0xff]  }
   0x4   :  { %221 = vmatprep.mubr.msk.bf16.mxu0 %vm140_vm0, %v262_v5  ;;  %222 = vmatprep.mubr.msk.bf16.mxu1 %vm140_vm0, %v265_v7  ;;  %v254_v9 = vld [vmem:[%s374_s1 + $0x8] sm:$0xff]   ;;  %v255_v10 = vld [vmem:[%s374_s1] sm:$0xff]   ;;  %v256_v11 = vld [vmem:[%s374_s1 + $0x58] sm:$0xff]  }
   0x5   :  { %v257_v12 = vld [vmem:[%s374_s1 + $0x50] sm:$0xff]   ;;  %v258_v13 = vld [vmem:[%s374_s1 + $0x48] sm:$0xff]   ;;  %v259_v14 = vld [vmem:[%s374_s1 + $0x40] sm:$0xff]  }
   0x6   :  { %150 = vmatpush1.bf16.msra.mxu0 %v249_v2  ;;  %236 = vmatpush1.bf16.msra.mxu1 %v249_v2  ;;  %v263_v16 = vld [vmem:[%s375_s0 + $0x10] ss:$8 sps:$4 sm:$0xff]   ;;  %v204_v17 = vld [vmem:[%s376_s2] ss:$0 sm:$0xff] }
   0x7   :  { %151 = vmatprep.subr.bf16.mxu0 %v266_v0  ;;  %225 = vmatprep.subr.bf16.mxu1 %v266_v0 }
   0xa   :  { %152 = vmatpush1.bf16.msra.mxu0 %v250_v3  ;;  %237 = vmatpush1.bf16.msra.mxu1 %v250_v3 }
   0xb   :  { %153 = vmatprep.subr.bf16.mxu0 %v266_v0  ;;  %226 = vmatprep.subr.bf16.mxu1 %v266_v0 }
   0xe   :  { %154 = vmatpush1.bf16.msra.mxu0 %v251_v4  ;;  %238 = vmatpush1.bf16.msra.mxu1 %v251_v4 }
   0xf   :  { %155 = vmatprep.subr.bf16.mxu0 %v266_v0  ;;  %227 = vmatprep.subr.bf16.mxu1 %v266_v0 }
  0x12   :  { %156 = vmatpush1.bf16.msra.mxu0 %v252_v6  ;;  %239 = vmatpush1.bf16.msra.mxu1 %v252_v6 }
  0x13   :  { %157 = vmatprep.subr.bf16.mxu0 %v266_v0  ;;  %228 = vmatprep.subr.bf16.mxu1 %v266_v0 }
  0x16   :  { %158 = vmatpush1.bf16.msra.mxu0 %v253_v8  ;;  %240 = vmatpush1.bf16.msra.mxu1 %v253_v8 }
  0x17   :  { %159 = vmatprep.subr.bf16.mxu0 %v266_v0  ;;  %229 = vmatprep.subr.bf16.mxu1 %v266_v0 }
  0x1a   :  { %160 = vmatpush1.bf16.msra.mxu0 %v254_v9  ;;  %241 = vmatpush1.bf16.msra.mxu1 %v254_v9 }
  0x1b   :  { %161 = vmatprep.subr.bf16.mxu0 %v266_v0  ;;  %230 = vmatprep.subr.bf16.mxu1 %v266_v0 }
  0x1e   :  { %162 = vmatpush1.bf16.msra.mxu0 %v255_v10  ;;  %242 = vmatpush1.bf16.msra.mxu1 %v255_v10 }
  0x1f   :  { %171 = vmatprep.subr.bf16.mxu0 %v266_v0  ;;  %231 = vmatprep.subr.bf16.mxu1 %v266_v0 }
  0x22   :  { %172 = vmatpush2.bf16.msra.mxu0 %v256_v11  ;;  %243 = vmatpush2.bf16.msra.mxu1 %v256_v11 }
  0x23   :  { %173 = vmatprep.subr.bf16.mxu0 %v266_v0  ;;  %232 = vmatprep.subr.bf16.mxu1 %v266_v0 }
  0x26   :  { %174 = vmatpush2.bf16.msra.mxu0 %v257_v12  ;;  %244 = vmatpush2.bf16.msra.mxu1 %v257_v12 }
  0x27   :  { %175 = vmatprep.subr.bf16.mxu0 %v266_v0  ;;  %233 = vmatprep.subr.bf16.mxu1 %v266_v0 }
  0x2a   :  { %176 = vmatpush2.bf16.msra.mxu0 %v258_v13  ;;  %245 = vmatpush2.bf16.msra.mxu1 %v258_v13 }
  0x2b   :  { %177 = vmatprep.subr.bf16.mxu0 %v266_v0  ;;  %234 = vmatprep.subr.bf16.mxu1 %v266_v0 }
  0x2e   :  { %178 = vmatpush2.bf16.msra.mxu0 %v259_v14  ;;  %246 = vmatpush2.bf16.msra.mxu1 %v259_v14 }
  0x31   :  { %180 = vmatmul.mubr.bf16.vlgmr.msra.gmra.mxu0 %v260_v15  ;;  %188 = vmatmul.mubr.bf16.vlgmr.msra.gmra.mxu1 %v263_v16 }
  0xf1   :  { %v181_v18 = vpop.f32.mrf.mxu0  ;;  %v189_v19 = vpop.f32.mrf.mxu1 }
  0xf2   :  { %v182_v20 = vadd.f32 %v204_v17, %v181_v18  ;;  %v190_v21 = vadd.f32 %v204_v17, %v189_v19 }
  0xf3   :  { %v183_v22 = vpop.f32.mrf.mxu0  ;;  %v191_v23 = vpop.f32.mrf.mxu1 }
  0xf4   :  { %196 = vst [vmem:[%s377_s3] sm:$0xff] %v182_v20  ;;  %198 = vst [vmem:[%s377_s3 + $0x10] sm:$0xff] %v190_v21 }
  0xf5   :  { %v184_v24 = vpop.f32.mrf.mxu0  ;;  %v192_v25 = vpop.f32.mrf.mxu1 }
  0xf6   :  { %v185_v26 = vadd.f32 %v204_v17, %v184_v24  ;;  %v193_v27 = vadd.f32 %v204_v17, %v192_v25 }
  0xf7   :  { %v186_v28 = vpop.f32.mrf.mxu0  ;;  %v194_v29 = vpop.f32.mrf.mxu1 }
  0xf8   :  { %197 = vst [vmem:[%s377_s3 + $0x8] sm:$0xff] %v185_v26  ;;  %199 = vst [vmem:[%s377_s3 + $0x18] sm:$0xff] %v193_v27 }

// kernel: accel101_sfc_forward.10
= control target key start
LH: loop header
LB: loop body
LE: loop exit
PB: predicated region body
PF: predicated region fallthrough
CT: control target
= control target key end

     0   :  { %s782_s15 = smov 0   ;;  %s784_s16 = smov 0   ;;  %s853_s0 = inlined_call_operand.vmem [shape: f32[4,4,4,128], index: 0, kind: input, shape index: {}, may-alias: {0,1,2}]   ;;  %s854_s1 = inlined_call_operand.vmem [shape: f32[4,4,4,128], index: 1, kind: input, shape index: {}, may-alias: {0,1,2}]   ;;  %s855_s2 = inlined_call_operand.vmem [shape: f32[4,4,4,128], index: 2, kind: input, shape index: {}, may-alias: {0,1,2}]   ;;  %s856_s3 = inlined_call_operand.vmem [shape: f32[8,4], index: 3, kind: input, shape index: {}]   ;;  %s857_s4 = inlined_call_operand.vmem [shape: f32[4,8,8,128], index: 4, kind: output, shape index: {}]  }
   0x1   :  { %s786_s17 = smov 0   ;;  %s788_s18 = smov 0  }
   0x2   :  { %s790_s19 = smov 0  }
   0x3 LB: > { %s23_s20 = sadd.s32 1, %s745_s17  ;;  %s26_s21 = sadd.s32 1, %s749_s18  ;;  %s753_s19 = sphi %s790_s19, %s14_s19   ;;  %s749_s18 = sphi %s788_s18, %s861_s18   ;;  %s745_s17 = sphi %s786_s17, %s860_s17   ;;  %s741_s16 = sphi %s784_s16, %s859_s16   ;;  %s737_s15 = sphi %s782_s15, %s858_s15  }
   0x4   : > { %p24_p0 = scmp.ge.s32.totalorder %s23_s20, 4  ;;  %p631_p1 = scmp.ge.s32.totalorder %s753_s19, 1 }
   0x5   : > { %p235_p2 = scmp.lt.s32.totalorder %s753_s19, 17 }
   0x6   : > { %s863_s20 = smov (%p24_p0, %s23_s20), 0  ;;  %s865_s21 = smov (!%p24_p0, %s26_s21), %s749_s18 }
   0x7   : > { %p236_p3 = pnand %p631_p1, %p235_p2  ;;  %p28_p4 = scmp.ge.s32.totalorder %s865_s21, 4 }
   0x8   : > { %s632_s22 = sadd.s32 (!%p236_p3), 4294967295, %s737_s15  ;;  %p293_p5 = scmp.lt.s32.totalorder (!%p236_p3), %s741_s16, 3 }
   0x9   : > { %s867_s21 = smov (%p28_p4, %s865_s21), 0  ;;  %239 = sbr.rel (%p236_p3) target bundleno = 225 (0xe1), region = 36 }
   0xa   : > { %p291_p6 = scmp.gt.s32.totalorder (!%p236_p3), %s632_s22, 0  ;;  %p633_p7 = scmp.lt.s32.totalorder (!%p236_p3), %s632_s22, 3 }
   0xb   : > { %p306_p8 = scmp.lt.s32.totalorder (!%p236_p3), %s737_s15, 3  ;;  %s312_s26 = sadd.s32 (!%p236_p3), 1, %s737_s15 }
   0xc   : > { %p313_p9 = scmp.lt.s32.totalorder (!%p236_p3), %s312_s26, 3 }
   0xe   : > { %v755_v0 = vmov 0.0   ;;  %s869_s16 = smov (!%p293_p5, %s741_s16), 3  ;;  %vm756_vm0 = vmmov 0   ;;  %s871_s22 = smov (!%p291_p6, %s632_s22), 0  ;;  %vm347_vm1 = vcmask 1043456   ;;  %v339_v6 = vld [vmem:[%s856_s3] sm:$0xff] }
   0xf   : > { %663 = vmatprep.subr.mxu0 %v755_v0  ;;  %668 = vmatprep.subr.mxu1 %v755_v0  ;;  %s638_s23 = sshll.u32 %s869_s16, 2  ;;  %s873_s22 = smov (!%p633_p7, %s871_s22), 3  ;;  %vm343_vm2 = vcmask 31744  }
  0x10   : > { %665 = vmatprep.mubr.msk.f32.mxu0 %vm756_vm0, %v755_v0  ;;  %670 = vmatprep.mubr.msk.f32.mxu1 %vm756_vm0, %v755_v0  ;;  %s307_s24 = scalar_select %p306_p8, %s737_s15, 3 }
  0x11   : > { %s298_s25 = sadd.s32 %s873_s22, %s638_s23  ;;  %s875_s26 = smov (!%p313_p9, %s312_s26), 3 }
  0x12   : > { %s639_s27 = sshll.u32 %s298_s25, 2  ;;  %s309_s28 = sadd.s32 %s638_s23, %s307_s24 }
  0x13   : > { %s300_s5 = scalar_lea.vmem %s853_s0, %s639_s27  ;;  %s641_s6 = sshll.u32 %s309_s28, 2 }
  0x14   : > { %s311_s9 = scalar_lea.vmem %s854_s1, %s641_s6  ;;  %v336_v1 = vld [vmem:[%s300_s5] sm:$0xf]  ;;  %s877_s26 = smov (!%p313_p9, %s875_s26), 3 }
  0x15   : > { %v337_v2 = vld [vmem:[%s311_s9] sm:$0xf]  ;;  %v340_v3 = vmul.f32 0.25, %v336_v1  ;;  %s320_s12 = sadd.s32 %s638_s23, %s877_s26  ;;  %s647_s25 = sshll.u32 %s737_s15, 1 }
  0x16   : > { %v341_v4 = vmul.f32 0.75, %v337_v2  ;;  %s646_s13 = sshll.u32 %s320_s12, 2  ;;  %p329_p10 = scmp.lt.s32.totalorder %s647_s25, 7 }
  0x17   : > { %s322_s24 = scalar_lea.vmem %s855_s2, %s646_s13  ;;  %s648_s27 = sshll.u32 %s869_s16, 3 }
  0x18   : > { %v342_v5 = vadd.f32 %v341_v4, %v340_v3  ;;  %v338_v7 = vld [vmem:[%s322_s24] sm:$0xf]  ;;  %s879_s25 = smov (!%p329_p10, %s647_s25), 7 }
  0x19   : > { %v422_v8 = vmul.f32 0.25, %v338_v7  ;;  %s332_s28 = sadd.s32 %s648_s27, %s879_s25 }
  0x1a   : > { %664 = vmatpush3.msk.msra.mxu0 %vm347_vm1, %v342_v5  ;;  %s649_s29 = sshll.u32 %s332_s28, 3 }
  0x1b   : > { %666 = vmatmul.mubr.msk.f32.vlgmr.msra.gmra.mxu0 %vm343_vm2, %v339_v6  ;;  %v423_v9 = vadd.f32 %v422_v8, %v341_v4  ;;  %s334_s23 = scalar_lea.vmem %s857_s4, %s649_s29 }
  0x1d   : > { %669 = vmatpush3.msk.msra.mxu1 %vm347_vm1, %v423_v9 }
  0x1e   : > { %671 = vmatmul.mubr.msk.f32.vlgmr.msra.gmra.mxu1 %vm343_vm2, %v339_v6 }
  0xdb   : > { %v417_v10 = vpop.f32.mrf.mxu0 }
  0xdc   : > { %421 = vst [vmem:[%s334_s23] sm:$0xff] %v417_v10 }
  0xdd   : > { %v667_v11 = vpop.f32.mrf.mxu0 }
  0xde   : > { %v493_v12 = vpop.f32.mrf.mxu1 }
  0xdf   : > { %654 = vst [vmem:[%s334_s23 + $0x8] sm:$0xff] %v493_v12 }
  0xe0   : > { %v672_v13 = vpop.f32.mrf.mxu1 }
  0xe1 PF: > { %s14_s19 = sadd.s32 1, %s753_s19   ;;  %s858_s15 = smov %s745_s17 }
  0xe2   : > { %p11_p11 = scmp.ge.s32.totalorder %s14_s19, 18   ;;  %s859_s16 = smov %s749_s18 }
  0xe3   : > { %s860_s17 = smov %s863_s20  ;;  %s861_s18 = smov %s867_s21 }
  0xe4   :  { %13 = sbr.rel (!%p11_p11) target bundleno = 3 (0x3), region = 73 }

// kernel: squeeze.2
= control target key start
LH: loop header
LB: loop body
LE: loop exit
PB: predicated region body
PF: predicated region fallthrough
CT: control target
= control target key end

     0   :  { %vm3_vm0 = vcmask 7168   ;;  %s178_s10 = smov 127   ;;  %s179_s19 = smov 125   ;;  %s328_s0 = inlined_call_operand.vmem [shape: f32[1,2,8,8], index: 0, kind: input, shape index: {}]   ;;  %s329_s1 = inlined_call_operand.vmem [shape: f32[128,1], index: 1, kind: output, shape index: {}]  }
   0x1   :  { %v30_v0 = vld [vmem:[%s328_s0] sm:$0xff]   ;;  %v142_v1 = vld [vmem:[%s328_s0 + $0x8] sm:$0xff]   ;;  %s177_s0 = smov 126   ;;  %s180_s20 = smov 124  }
   0x2   :  { %31 = vrot.lane.b32.xlu1 %v30_v0, %s177_s0  ;;  %14 = vrot.lane.b32.xlu0 %v30_v0, %s178_s10  ;;  %4 = vst.msk [vmem:[%s329_s1] ss:$8 sm:$0xf] %vm3_vm0, %v30_v0   ;;  %5 = vst.msk [vmem:[%s329_s1] ss:$8 sm:$0xf0] %vm3_vm0, %v30_v0  }
   0x3   :  { %133 = vst.msk [vmem:[%s329_s1 + $0x40] ss:$8 sm:$0xf] %vm3_vm0, %v142_v1   ;;  %134 = vst.msk [vmem:[%s329_s1 + $0x40] ss:$8 sm:$0xf0] %vm3_vm0, %v142_v1  }
   0x4   :  { %s181_s21 = smov 123   ;;  %s182_s22 = smov 122  }
   0x5   :  { %s183_s23 = smov 121  }
   0x6   :  { %40 = vrot.lane.b32.xlu1 %v142_v1, %s177_s0  ;;  %23 = vrot.lane.b32.xlu0 %v142_v1, %s178_s10 }
   0xa   :  { %57 = vrot.lane.b32.xlu1 %v142_v1, %s179_s19  ;;  %48 = vrot.lane.b32.xlu0 %v30_v0, %s179_s19 }
   0xe   :  { %74 = vrot.lane.b32.xlu1 %v142_v1, %s180_s20  ;;  %65 = vrot.lane.b32.xlu0 %v30_v0, %s180_s20 }
  0x12   :  { %91 = vrot.lane.b32.xlu1 %v142_v1, %s181_s21  ;;  %82 = vrot.lane.b32.xlu0 %v30_v0, %s181_s21 }
  0x16   :  { %108 = vrot.lane.b32.xlu1 %v142_v1, %s182_s22  ;;  %99 = vrot.lane.b32.xlu0 %v30_v0, %s182_s22 }
  0x1a   :  { %125 = vrot.lane.b32.xlu1 %v142_v1, %s183_s23  ;;  %116 = vrot.lane.b32.xlu0 %v30_v0, %s183_s23 }
  0x74   :  { %v32_v2 = vpop.permute.xlu1 %31   ;;  %v15_v3 = vpop.permute.xlu0 %14  }
  0x75   :  { %140 = vst.msk [vmem:[%s329_s1 + $0x2] ss:$8 sm:$0xf] %vm3_vm0, %v32_v2   ;;  %141 = vst.msk [vmem:[%s329_s1 + $0x2] ss:$8 sm:$0xf0] %vm3_vm0, %v32_v2  }
  0x76   :  { %135 = vst.msk [vmem:[%s329_s1 + $0x1] ss:$8 sm:$0xf] %vm3_vm0, %v15_v3   ;;  %136 = vst.msk [vmem:[%s329_s1 + $0x1] ss:$8 sm:$0xf0] %vm3_vm0, %v15_v3  }
  0x78   :  { %v41_v4 = vpop.permute.xlu1 %40   ;;  %v24_v5 = vpop.permute.xlu0 %23  }
  0x79   :  { %143 = vst.msk [vmem:[%s329_s1 + $0x42] ss:$8 sm:$0xf] %vm3_vm0, %v41_v4   ;;  %144 = vst.msk [vmem:[%s329_s1 + $0x42] ss:$8 sm:$0xf0] %vm3_vm0, %v41_v4  }
  0x7a   :  { %138 = vst.msk [vmem:[%s329_s1 + $0x41] ss:$8 sm:$0xf] %vm3_vm0, %v24_v5   ;;  %139 = vst.msk [vmem:[%s329_s1 + $0x41] ss:$8 sm:$0xf0] %vm3_vm0, %v24_v5  }
  0x7c   :  { %v58_v6 = vpop.permute.xlu1 %57   ;;  %v49_v7 = vpop.permute.xlu0 %48  }
  0x7d   :  { %148 = vst.msk [vmem:[%s329_s1 + $0x43] ss:$8 sm:$0xf] %vm3_vm0, %v58_v6   ;;  %149 = vst.msk [vmem:[%s329_s1 + $0x43] ss:$8 sm:$0xf0] %vm3_vm0, %v58_v6  }
  0x7e   :  { %145 = vst.msk [vmem:[%s329_s1 + $0x3] ss:$8 sm:$0xf] %vm3_vm0, %v49_v7   ;;  %146 = vst.msk [vmem:[%s329_s1 + $0x3] ss:$8 sm:$0xf0] %vm3_vm0, %v49_v7  }
  0x80   :  { %v75_v8 = vpop.permute.xlu1 %74   ;;  %v66_v9 = vpop.permute.xlu0 %65  }
  0x81   :  { %153 = vst.msk [vmem:[%s329_s1 + $0x44] ss:$8 sm:$0xf] %vm3_vm0, %v75_v8   ;;  %154 = vst.msk [vmem:[%s329_s1 + $0x44] ss:$8 sm:$0xf0] %vm3_vm0, %v75_v8  }
  0x82   :  { %150 = vst.msk [vmem:[%s329_s1 + $0x4] ss:$8 sm:$0xf] %vm3_vm0, %v66_v9   ;;  %151 = vst.msk [vmem:[%s329_s1 + $0x4] ss:$8 sm:$0xf0] %vm3_vm0, %v66_v9  }
  0x84   :  { %v92_v10 = vpop.permute.xlu1 %91   ;;  %v83_v11 = vpop.permute.xlu0 %82  }
  0x85   :  { %158 = vst.msk [vmem:[%s329_s1 + $0x45] ss:$8 sm:$0xf] %vm3_vm0, %v92_v10   ;;  %159 = vst.msk [vmem:[%s329_s1 + $0x45] ss:$8 sm:$0xf0] %vm3_vm0, %v92_v10  }
  0x86   :  { %155 = vst.msk [vmem:[%s329_s1 + $0x5] ss:$8 sm:$0xf] %vm3_vm0, %v83_v11   ;;  %156 = vst.msk [vmem:[%s329_s1 + $0x5] ss:$8 sm:$0xf0] %vm3_vm0, %v83_v11  }
  0x88   :  { %v109_v12 = vpop.permute.xlu1 %108   ;;  %v100_v13 = vpop.permute.xlu0 %99  }
  0x89   :  { %163 = vst.msk [vmem:[%s329_s1 + $0x46] ss:$8 sm:$0xf] %vm3_vm0, %v109_v12   ;;  %164 = vst.msk [vmem:[%s329_s1 + $0x46] ss:$8 sm:$0xf0] %vm3_vm0, %v109_v12  }
  0x8a   :  { %160 = vst.msk [vmem:[%s329_s1 + $0x6] ss:$8 sm:$0xf] %vm3_vm0, %v100_v13   ;;  %161 = vst.msk [vmem:[%s329_s1 + $0x6] ss:$8 sm:$0xf0] %vm3_vm0, %v100_v13  }
  0x8c   :  { %v126_v14 = vpop.permute.xlu1 %125   ;;  %v117_v15 = vpop.permute.xlu0 %116  }
  0x8d   :  { %168 = vst.msk [vmem:[%s329_s1 + $0x47] ss:$8 sm:$0xf] %vm3_vm0, %v126_v14   ;;  %169 = vst.msk [vmem:[%s329_s1 + $0x47] ss:$8 sm:$0xf0] %vm3_vm0, %v126_v14  }
  0x8e   :  { %165 = vst.msk [vmem:[%s329_s1 + $0x7] ss:$8 sm:$0xf] %vm3_vm0, %v117_v15   ;;  %166 = vst.msk [vmem:[%s329_s1 + $0x7] ss:$8 sm:$0xf0] %vm3_vm0, %v117_v15  }

// kernel: accel101_sfc_forward.12
= control target key start
LH: loop header
LB: loop body
LE: loop exit
PB: predicated region body
PF: predicated region fallthrough
CT: control target
= control target key end

     0   :  { %v670_v0 = vmov 0   ;;  %s1484_s4 = inlined_call_operand.vmem [shape: f32[128,1], index: 4, kind: input, shape index: {}]   ;;  %s1485_s5 = inlined_call_operand.vmem [shape: f32[128,1], index: 5, kind: input, shape index: {}]   ;;  %s1486_s1 = inlined_call_operand.vmem [shape: f32[128,128], index: 1, kind: input, shape index: {}]   ;;  %s1487_s2 = inlined_call_operand.vmem [shape: f32[128,128], index: 2, kind: input, shape index: {}]   ;;  %s1488_s0 = inlined_call_operand.vmem [shape: f32[128,128], index: 0, kind: input, shape index: {}]   ;;  %s1489_s3 = inlined_call_operand.vmem [shape: f32[128,128], index: 3, kind: input, shape index: {}]   ;;  %s1490_s6 = inlined_call_operand.vmem [shape: f32[128,128], index: 6, kind: output, shape index: {}]  }
   0x1   :  { %669 = vset.pattern.permute.xlu1 %v670_v0  ;;  %668 = vset.pattern.permute.xlu0 %v670_v0  ;;  %v709_v1 = vld [vmem:[%s1484_s4 + $0x10] sm:$0xff]  ;;  %v719_v3 = vld [vmem:[%s1484_s4] sm:$0xff]  ;;  %v732_v8 = vld [vmem:[%s1484_s4 + $0x18] sm:$0xff] }
   0x2   :  { %v714_v2 = vld [vmem:[%s1485_s5 + $0x10] sm:$0xff]  ;;  %v73_v5 = vsub.f32 1.0, %v709_v1  ;;  %v726_v6 = vld [vmem:[%s1485_s5] sm:$0xff]  ;;  %v71_v7 = vsub.f32 1.0, %v719_v3  ;;  %v737_v9 = vld [vmem:[%s1485_s5 + $0x18] sm:$0xff]  ;;  %v74_v13 = vsub.f32 1.0, %v732_v8 }
   0x3   :  { %v1500_v4 = vsub.f32 1.0, %v714_v2  ;;  %v741_v10 = vmul.f32 %v714_v2, %v709_v1  ;;  %v1502_v11 = vsub.f32 1.0, %v726_v6  ;;  %v1501_v12 = vsub.f32 1.0, %v737_v9  ;;  %v749_v14 = vld [vmem:[%s1484_s4 + $0x8] sm:$0xff]  ;;  %v779_v22 = vld [vmem:[%s1484_s4 + $0x20] sm:$0xff]  ;;  %v805_v31 = vld [vmem:[%s1484_s4 + $0x38] sm:$0xff] }
   0x4   :  { %v754_v15 = vld [vmem:[%s1485_s5 + $0x8] sm:$0xff]  ;;  %v763_v17 = vmul.f32 %v726_v6, %v719_v3  ;;  %v1491_v20 = vsub.f32 1.0, %v749_v14  ;;  %v784_v23 = vld [vmem:[%s1485_s5 + $0x20] sm:$0xff]  ;;  %v75_v30 = vsub.f32 1.0, %v779_v22  ;;  %v810_v32 = vld [vmem:[%s1485_s5 + $0x38] sm:$0xff]  ;;  %v78_v42 = vsub.f32 1.0, %v805_v31 }
   0x5   :  { %1504 = vst [vmem:[#allocation2_spill] sm:$0xff] %v741_v10  ;;  %v759_v16 = vld [vmem:[%s1484_s4 + $0x28] sm:$0xff]  ;;  %v89_v18 = vmul.f32 %v73_v5, %v1500_v4  ;;  %v1503_v19 = vsub.f32 1.0, %v754_v15  ;;  %v87_v24 = vmul.f32 %v71_v7, %v1502_v11  ;;  %v90_v25 = vmul.f32 %v74_v13, %v1501_v12  ;;  %v815_v33 = vld [vmem:[%s1484_s4 + $0x30] sm:$0xff]  ;;  %v835_v37 = vld [vmem:[%s1484_s4 + $0x40] sm:$0xff] }
   0x6   :  { %v774_v21 = vld [vmem:[%s1485_s5 + $0x28] sm:$0xff]  ;;  %v76_v27 = vsub.f32 1.0, %v759_v16  ;;  %v1498_v29 = vsub.f32 1.0, %v784_v23  ;;  %v820_v34 = vld [vmem:[%s1485_s5 + $0x30] sm:$0xff]  ;;  %v840_v38 = vld [vmem:[%s1485_s5 + $0x40] sm:$0xff]  ;;  %v1494_v41 = vsub.f32 1.0, %v810_v32  ;;  %v1005_v11 = vmul.f32 %v810_v32, %v805_v31 }
   0x7   :  { %179 = vperm.xlu1 %669, %v89_v18   ;;  %v1499_v26 = vsub.f32 1.0, %v774_v21  ;;  %169 = vperm.xlu0 %668, %v87_v24   ;;  %v88_v28 = vmul.f32 %v1491_v20, %v1503_v19  ;;  %v825_v35 = vld [vmem:[%s1484_s4 + $0x48] sm:$0xff]  ;;  %v845_v39 = vld [vmem:[%s1484_s4 + $0x58] sm:$0xff]  ;;  %v859_v44 = vld [vmem:[%s1484_s4 + $0x50] sm:$0xff]  ;;  %v1492_v47 = vsub.f32 1.0, %v820_v34  ;;  %v77_v48 = vsub.f32 1.0, %v815_v33 }
   0x8   :  { %v830_v36 = vld [vmem:[%s1485_s5 + $0x48] sm:$0xff]  ;;  %v854_v43 = vld [vmem:[%s1485_s5 + $0x58] sm:$0xff]  ;;  %v864_v45 = vld [vmem:[%s1485_s5 + $0x50] sm:$0xff]  ;;  %v91_v46 = vmul.f32 %v75_v30, %v1498_v29  ;;  %v80_v50 = vsub.f32 1.0, %v825_v35  ;;  %v1495_v51 = vsub.f32 1.0, %v840_v38  ;;  %v79_v52 = vsub.f32 1.0, %v835_v37 }
   0x9   :  { %v92_v40 = vmul.f32 %v76_v27, %v1499_v26  ;;  %v1493_v49 = vsub.f32 1.0, %v830_v36  ;;  %v1497_v53 = vsub.f32 1.0, %v854_v43  ;;  %v82_v54 = vsub.f32 1.0, %v845_v39  ;;  %v881_v57 = vld [vmem:[%s1485_s5 + $0x68] sm:$0xff]  ;;  %v893_v60 = vld [vmem:[%s1485_s5 + $0x60] sm:$0xff]  ;;  %v905_v63 = vld [vmem:[%s1484_s4 + $0x78] sm:$0xff] }
   0xa   :  { %v1496_v55 = vsub.f32 1.0, %v864_v45  ;;  %v81_v56 = vsub.f32 1.0, %v859_v44  ;;  %v94_v58 = vmul.f32 %v78_v42, %v1494_v41  ;;  %v888_v59 = vld [vmem:[%s1484_s4 + $0x68] sm:$0xff]  ;;  %v93_v61 = vmul.f32 %v77_v48, %v1492_v47  ;;  %v900_v62 = vld [vmem:[%s1484_s4 + $0x60] sm:$0xff]  ;;  %v910_v0 = vld [vmem:[%s1484_s4 + $0x70] sm:$0xff]  ;;  %1508 = vst [vmem:[#allocation6_spill] sm:$0xff] %v1005_v11 }
   0xb   :  { %184 = vperm.xlu1 %669, %v90_v25   ;;  %174 = vperm.xlu0 %668, %v88_v28   ;;  %v96_v18 = vmul.f32 %v80_v50, %v1493_v49  ;;  %v95_v24 = vmul.f32 %v79_v52, %v1495_v51  ;;  %v98_v28 = vmul.f32 %v82_v54, %v1497_v53  ;;  %v83_v47 = vsub.f32 1.0, %v900_v62 }
   0xc   :  { %v86_v49 = vsub.f32 1.0, %v905_v63  ;;  %v85_v41 = vsub.f32 1.0, %v910_v0  ;;  %v929_v51 = vmul.f32 %v71_v7, %v726_v6  ;;  %v942_v53 = vmul.f32 %v76_v27, %v774_v21  ;;  %v967_v27 = vld [vmem:[%s1485_s5 + $0x70] sm:$0xff] }
   0xd   :  { %v945_v29 = vmul.f32 %v75_v30, %v784_v23  ;;  %v948_v7 = vmul.f32 %v78_v42, %v810_v32  ;;  %v957_v26 = vmul.f32 %v79_v52, %v840_v38  ;;  %v970_v30 = vmul.f32 %v82_v54, %v854_v43 }
   0xe   :  { %v973_v42 = vmul.f32 %v81_v56, %v864_v45  ;;  %v985_v4 = vmul.f32 %v85_v41, %v967_v27  ;;  %v989_v54 = vmul.f32 %v754_v15, %v749_v14  ;;  %v997_v12 = vmul.f32 %v774_v21, %v759_v16 }
   0xf   :  { %194 = vperm.xlu1 %669, %v92_v40   ;;  %189 = vperm.xlu0 %668, %v91_v46   ;;  %v97_v40 = vmul.f32 %v81_v56, %v1496_v55  ;;  %v84_v46 = vsub.f32 1.0, %v888_v59  ;;  %v934_v55 = vmul.f32 %v74_v13, %v737_v9  ;;  %v954_v13 = vmul.f32 %v80_v50, %v830_v36 }
  0x10   :  { %v979_v50 = vmul.f32 %v83_v47, %v893_v60  ;;  %v993_v56 = vmul.f32 %v737_v9, %v732_v8  ;;  %1506 = vst [vmem:[#allocation4_spill] sm:$0xff] %v997_v12  ;;  %v1009_v19 = vmul.f32 %v820_v34, %v815_v33  ;;  %v1013_v20 = vmul.f32 %v830_v36, %v825_v35 }
  0x11   :  { %v1021_v25 = vmul.f32 %v854_v43, %v845_v39  ;;  %v1029_v11 = vmul.f32 %v881_v57, %v888_v59 }
  0x12   :  { %1505 = vst [vmem:[#allocation3_spill] sm:$0xff] %v993_v56  ;;  %1509 = vst [vmem:[#allocation7_spill] sm:$0xff] %v1009_v19  ;;  %v1033_v19 = vmul.f32 %v893_v60, %v900_v62 }
  0x13   :  { %204 = vperm.xlu1 %669, %v94_v58   ;;  %199 = vperm.xlu0 %668, %v93_v61   ;;  %v939_v58 = vmul.f32 %v73_v5, %v714_v2  ;;  %v951_v61 = vmul.f32 %v77_v48, %v820_v34  ;;  %v962_v5 = vld [vmem:[%s1485_s5 + $0x78] sm:$0xff]  ;;  %v976_v48 = vmul.f32 %v84_v46, %v881_v57 }
  0x14   :  { %v982_v52 = vmul.f32 %v86_v49, %v962_v5  ;;  %1510 = vst [vmem:[#allocation8_spill] sm:$0xff] %v1013_v20  ;;  %1512 = vst [vmem:[#allocation10_spill] sm:$0xff] %v1021_v25  ;;  %v1037_v20 = vmul.f32 %v962_v5, %v905_v63  ;;  %v1518_v25 = vsub.f32 1.0, %v881_v57  ;;  %v70_v12 = vsub.f32 1.0, %v962_v5 }
  0x15   :  { %1514 = vst [vmem:[#allocation12_spill] sm:$0xff] %v1029_v11  ;;  %1515 = vst [vmem:[#allocation13_spill] sm:$0xff] %v1033_v19  ;;  %v1519_v11 = vsub.f32 1.0, %v893_v60  ;;  %v69_v19 = vsub.f32 1.0, %v967_v27 }
  0x16   :  { %1516 = vst [vmem:[#allocation14_spill] sm:$0xff] %v1037_v20  ;;  %v102_v56 = vmul.f32 %v86_v49, %v70_v12  ;;  %v1524_v49 = vsub.f32 1.0, %v774_v21  ;;  %v1529_v21 = vsub.f32 1.0, %v840_v38 }
  0x17   :  { %214 = vperm.xlu1 %669, %v96_v18   ;;  %209 = vperm.xlu0 %668, %v95_v24   ;;  %v1001_v18 = vmul.f32 %v784_v23, %v779_v22  ;;  %v1017_v24 = vmul.f32 %v840_v38, %v835_v37  ;;  %v99_v10 = vmul.f32 %v83_v47, %v1519_v11  ;;  %v1522_v11 = vsub.f32 1.0, %v737_v9 }
  0x18   :  { %v101_v20 = vmul.f32 %v85_v41, %v69_v19  ;;  %v1526_v9 = vsub.f32 1.0, %v810_v32  ;;  %v1531_v32 = vsub.f32 1.0, %v864_v45  ;;  %v118_v38 = vmul.f32 %v70_v12, %v905_v63 }
  0x19   :  { %1507 = vst [vmem:[#allocation5_spill] sm:$0xff] %v1001_v18  ;;  %1511 = vst [vmem:[#allocation9_spill] sm:$0xff] %v1017_v24  ;;  %v1025_v18 = vmul.f32 %v864_v45, %v859_v44  ;;  %v1041_v24 = vmul.f32 %v967_v27, %v910_v0  ;;  %v106_v47 = vmul.f32 %v1522_v11, %v732_v8  ;;  %v1535_v12 = vld [vmem:[#allocation3_spill] sm:$0xff] }
  0x1a   :  { %v110_v8 = vmul.f32 %v1526_v9, %v805_v31 }
  0x1b   :  { %1513 = vst [vmem:[#allocation11_spill] sm:$0xff] %v1025_v18  ;;  %1517 = vst [vmem:[#allocation15_spill] sm:$0xff] %v1041_v24  ;;  %224 = vperm.xlu1 %669, %v98_v28   ;;  %v100_v18 = vmul.f32 %v84_v46, %v1518_v25  ;;  %219 = vperm.xlu0 %668, %v97_v40   ;;  %v1520_v24 = vsub.f32 1.0, %v754_v15  ;;  %v1521_v25 = vsub.f32 1.0, %v726_v6  ;;  %v1525_v6 = vsub.f32 1.0, %v784_v23  ;;  %v1541_v45 = vld [vmem:[#allocation8_spill] sm:$0xff] }
  0x1c   :  { %v108_v40 = vmul.f32 %v1524_v49, %v759_v16  ;;  %v1530_v23 = vsub.f32 1.0, %v854_v43  ;;  %v1534_v43 = vsub.f32 1.0, %v749_v14 }
  0x1d   :  { %v104_v28 = vmul.f32 %v1520_v24, %v749_v14  ;;  %v103_v46 = vmul.f32 %v1521_v25, %v719_v3  ;;  %v107_v3 = vmul.f32 %v1525_v6, %v779_v22  ;;  %v111_v22 = vmul.f32 %v1529_v21, %v835_v37  ;;  %v1536_v14 = vld [vmem:[#allocation2_spill] sm:$0xff] }
  0x1e   :  { %v114_v31 = vmul.f32 %v1530_v23, %v845_v39  ;;  %v117_v39 = vmul.f32 %v69_v19, %v910_v0 }
  0x1f   :  { %234 = vperm.xlu1 %669, %v100_v18   ;;  %229 = vperm.xlu0 %668, %v99_v10   ;;  %v1523_v10 = vsub.f32 1.0, %v714_v2  ;;  %v1527_v2 = vsub.f32 1.0, %v820_v34  ;;  %v1532_v34 = vsub.f32 1.0, %v881_v57 }
  0x20   :  { %v1538_v19 = vld [vmem:[#allocation5_spill] sm:$0xff] }
  0x21   :  { %v105_v41 = vmul.f32 %v1523_v10, %v709_v1  ;;  %v109_v1 = vmul.f32 %v1527_v2, %v815_v33  ;;  %v113_v33 = vmul.f32 %v1531_v32, %v859_v44  ;;  %v120_v44 = vmul.f32 %v1534_v43, %v754_v15  ;;  %v1537_v15 = vld [vmem:[#allocation4_spill] sm:$0xff]  ;;  %v152_v43 = vld [vmem:[%s1488_s0 + $0x8] sm:$0xff] }
  0x23   :  { %244 = vperm.xlu1 %669, %v102_v56   ;;  %239 = vperm.xlu0 %668, %v101_v20   ;;  %v1528_v20 = vsub.f32 1.0, %v830_v36  ;;  %v1533_v36 = vsub.f32 1.0, %v893_v60  ;;  %v1547_v60 = vld [vmem:[#allocation14_spill] sm:$0xff] }
  0x25   :  { %v112_v16 = vmul.f32 %v1528_v20, %v825_v35  ;;  %v116_v35 = vmul.f32 %v1532_v34, %v888_v59  ;;  %v115_v37 = vmul.f32 %v1533_v36, %v900_v62  ;;  %v1548_v62 = vld [vmem:[#allocation15_spill] sm:$0xff] }
  0x26   :  { %v264_v36 = vld [vmem:[%s1486_s1 + $0x8] sm:$0xff] }
  0x27   :  { %286 = vperm.xlu1 %669, %v104_v28   ;;  %281 = vperm.xlu0 %668, %v103_v46  }
  0x2b   :  { %296 = vperm.xlu1 %669, %v106_v47   ;;  %291 = vperm.xlu0 %668, %v105_v41  }
  0x2f   :  { %306 = vperm.xlu1 %669, %v108_v40   ;;  %301 = vperm.xlu0 %668, %v107_v3  }
  0x33   :  { %316 = vperm.xlu1 %669, %v110_v8   ;;  %311 = vperm.xlu0 %668, %v109_v1  }
  0x37   :  { %326 = vperm.xlu1 %669, %v112_v16   ;;  %321 = vperm.xlu0 %668, %v111_v22  }
  0x3b   :  { %336 = vperm.xlu1 %669, %v114_v31   ;;  %331 = vperm.xlu0 %668, %v113_v33  }
  0x3f   :  { %346 = vperm.xlu1 %669, %v116_v35   ;;  %341 = vperm.xlu0 %668, %v115_v37  }
  0x43   :  { %356 = vperm.xlu1 %669, %v118_v38   ;;  %351 = vperm.xlu0 %668, %v117_v39   ;;  %v263_v38 = vld [vmem:[%s1486_s1] sm:$0xff] }
  0x47   :  { %414 = vperm.xlu1 %669, %v120_v44   ;;  %409 = vperm.xlu0 %668, %v929_v51   ;;  %v1542_v51 = vld [vmem:[#allocation9_spill] sm:$0xff]  ;;  %v392_v44 = vld [vmem:[%s1487_s2 + $0x8] sm:$0xff] }
  0x4b   :  { %424 = vperm.xlu1 %669, %v934_v55   ;;  %419 = vperm.xlu0 %668, %v939_v58   ;;  %v1546_v55 = vld [vmem:[#allocation13_spill] sm:$0xff] }
  0x4f   :  { %434 = vperm.xlu1 %669, %v942_v53   ;;  %429 = vperm.xlu0 %668, %v945_v29   ;;  %v1540_v29 = vld [vmem:[#allocation7_spill] sm:$0xff] }
  0x50   :  { %v1544_v53 = vld [vmem:[#allocation11_spill] sm:$0xff] }
  0x53   :  { %444 = vperm.xlu1 %669, %v948_v7   ;;  %439 = vperm.xlu0 %668, %v951_v61  }
  0x57   :  { %454 = vperm.xlu1 %669, %v954_v13   ;;  %449 = vperm.xlu0 %668, %v957_v26   ;;  %v1539_v26 = vld [vmem:[#allocation6_spill] sm:$0xff] }
  0x5b   :  { %464 = vperm.xlu1 %669, %v970_v30   ;;  %459 = vperm.xlu0 %668, %v973_v42  }
  0x5f   :  { %474 = vperm.xlu1 %669, %v976_v48   ;;  %469 = vperm.xlu0 %668, %v979_v50  }
  0x63   :  { %484 = vperm.xlu1 %669, %v982_v52   ;;  %479 = vperm.xlu0 %668, %v985_v4   ;;  %v1543_v4 = vld [vmem:[#allocation10_spill] sm:$0xff] }
  0x67   :  { %542 = vperm.xlu1 %669, %v989_v54   ;;  %537 = vperm.xlu0 %668, %v763_v17   ;;  %v1545_v17 = vld [vmem:[#allocation12_spill] sm:$0xff] }
  0x6b   :  { %552 = vperm.xlu1 %669, %v1535_v12   ;;  %547 = vperm.xlu0 %668, %v1536_v14   ;;  %v151_v12 = vld [vmem:[%s1488_s0] sm:$0xff] }
  0x6f   :  { %562 = vperm.xlu1 %669, %v1537_v15   ;;  %557 = vperm.xlu0 %668, %v1538_v19   ;;  %v391_v15 = vld [vmem:[%s1487_s2] sm:$0xff] }
  0x73   :  { %572 = vperm.xlu1 %669, %v1539_v26   ;;  %567 = vperm.xlu0 %668, %v1540_v29   ;;  %v266_v26 = vld [vmem:[%s1486_s1 + $0x18] sm:$0xff] }
  0x77   :  { %582 = vperm.xlu1 %669, %v1541_v45   ;;  %577 = vperm.xlu0 %668, %v1542_v51   ;;  %v265_v51 = vld [vmem:[%s1486_s1 + $0x10] sm:$0xff] }
  0x7b   :  { %592 = vperm.xlu1 %669, %v1543_v4   ;;  %587 = vperm.xlu0 %668, %v1544_v53  }
  0x7f   :  { %602 = vperm.xlu1 %669, %v1545_v17   ;;  %597 = vperm.xlu0 %668, %v1546_v55   ;;  %v154_v55 = vld [vmem:[%s1488_s0 + $0x18] sm:$0xff] }
  0x82   :  { %v1125_v57 = vpop.permute.xlu1 %179  ;;  %v1127_v59 = vpop.permute.xlu0 %169 }
  0x83   :  { %612 = vperm.xlu1 %669, %v1547_v60   ;;  %607 = vperm.xlu0 %668, %v1548_v62   ;;  %v247_v17 = vmul.f32 %v1127_v59, %v151_v12  ;;  %v394_v62 = vld [vmem:[%s1487_s2 + $0x18] sm:$0xff]  ;;  %v393_v59 = vld [vmem:[%s1487_s2 + $0x10] sm:$0xff] }
  0x86   :  { %v1131_v63 = vpop.permute.xlu1 %184  ;;  %v175_v0 = vpop.permute.xlu0 %174 }
  0x87   :  { %v248_v45 = vmul.f32 %v175_v0, %v152_v43  ;;  %v520_v0 = vld [vmem:[%s1489_s3 + $0x8] sm:$0xff]  ;;  %v250_v12 = vmul.f32 %v1131_v63, %v154_v55 }
  0x88   :  { %v268_v43 = vld [vmem:[%s1486_s1 + $0x28] sm:$0xff] }
  0x89   :  { %v396_v63 = vld [vmem:[%s1487_s2 + $0x28] sm:$0xff] }
  0x8a   :  { %v1133_v58 = vpop.permute.xlu1 %194  ;;  %v1135_v7 = vpop.permute.xlu0 %189 }
  0x8e   :  { %v1137_v61 = vpop.permute.xlu1 %204  ;;  %v1139_v13 = vpop.permute.xlu0 %199 }
  0x92   :  { %v1141_v5 = vpop.permute.xlu1 %214  ;;  %v1143_v27 = vpop.permute.xlu0 %209 }
  0x96   :  { %v1145_v30 = vpop.permute.xlu1 %224  ;;  %v1147_v42 = vpop.permute.xlu0 %219 }
  0x9a   :  { %v1149_v48 = vpop.permute.xlu1 %234  ;;  %v1151_v50 = vpop.permute.xlu0 %229 }
  0x9e   :  { %v1153_v52 = vpop.permute.xlu1 %244  ;;  %v1155_v54 = vpop.permute.xlu0 %239 }
  0xa2   :  { %v287_v56 = vpop.permute.xlu1 %286  ;;  %v282_v18 = vpop.permute.xlu0 %281 }
  0xa3   :  { %v360_v14 = vmul.f32 %v287_v56, %v264_v36  ;;  %v359_v19 = vmul.f32 %v282_v18, %v263_v38  ;;  %v153_v56 = vld [vmem:[%s1488_s0 + $0x10] sm:$0xff] }
  0xa5   :  { %v376_v18 = vadd.f32 %v360_v14, %v248_v45  ;;  %v375_v36 = vadd.f32 %v359_v19, %v247_v17 }
  0xa6   :  { %v297_v24 = vpop.permute.xlu1 %296  ;;  %v292_v28 = vpop.permute.xlu0 %291 }
  0xa7   :  { %v361_v38 = vmul.f32 %v292_v28, %v265_v51  ;;  %v156_v28 = vld [vmem:[%s1488_s0 + $0x28] sm:$0xff] }
  0xaa   :  { %v1157_v25 = vpop.permute.xlu1 %306  ;;  %v1159_v46 = vpop.permute.xlu0 %301 }
  0xab   :  { %v364_v55 = vmul.f32 %v1157_v25, %v268_v43  ;;  %v252_v25 = vmul.f32 %v1133_v58, %v156_v28  ;;  %v523_v28 = vld [vmem:[%s1489_s3 + $0x20] sm:$0xff] }
  0xae   :  { %v1161_v11 = vpop.permute.xlu1 %316  ;;  %v1163_v47 = vpop.permute.xlu0 %311 }
  0xb2   :  { %v1165_v10 = vpop.permute.xlu1 %326  ;;  %v1167_v41 = vpop.permute.xlu0 %321 }
  0xb6   :  { %v1169_v49 = vpop.permute.xlu1 %336  ;;  %v1171_v40 = vpop.permute.xlu0 %331 }
  0xba   :  { %v1173_v6 = vpop.permute.xlu1 %346  ;;  %v1175_v3 = vpop.permute.xlu0 %341 }
  0xbe   :  { %v1177_v9 = vpop.permute.xlu1 %356  ;;  %v1179_v8 = vpop.permute.xlu0 %351 }
  0xc2   :  { %v415_v2 = vpop.permute.xlu1 %414  ;;  %v410_v1 = vpop.permute.xlu0 %409 }
  0xc3   :  { %v488_v4 = vmul.f32 %v415_v2, %v392_v44  ;;  %v487_v60 = vmul.f32 %v410_v1, %v391_v15  ;;  %v362_v2 = vmul.f32 %v297_v24, %v266_v26  ;;  %v519_v1 = vld [vmem:[%s1489_s3] sm:$0xff] }
  0xc4   :  { %v267_v24 = vld [vmem:[%s1486_s1 + $0x20] sm:$0xff] }
  0xc5   :  { %v504_v14 = vadd.f32 %v488_v4, %v376_v18  ;;  %v503_v19 = vadd.f32 %v487_v60, %v375_v36  ;;  %v522_v4 = vld [vmem:[%s1489_s3 + $0x18] sm:$0xff] }
  0xc6   :  { %v425_v20 = vpop.permute.xlu1 %424  ;;  %v420_v16 = vpop.permute.xlu0 %419  ;;  %v270_v18 = vld [vmem:[%s1486_s1 + $0x38] sm:$0xff] }
  0xc7   :  { %v490_v15 = vmul.f32 %v425_v20, %v394_v62  ;;  %v489_v51 = vmul.f32 %v420_v16, %v393_v59  ;;  %v155_v20 = vld [vmem:[%s1488_s0 + $0x20] sm:$0xff]  ;;  %v521_v62 = vld [vmem:[%s1489_s3 + $0x10] sm:$0xff] }
  0xc8   :  { %v395_v16 = vld [vmem:[%s1487_s2 + $0x20] sm:$0xff] }
  0xca   :  { %v1181_v21 = vpop.permute.xlu1 %434  ;;  %v1183_v22 = vpop.permute.xlu0 %429 }
  0xcb   :  { %v492_v43 = vmul.f32 %v1181_v21, %v396_v63  ;;  %v272_v63 = vld [vmem:[%s1486_s1 + $0x48] sm:$0xff] }
  0xce   :  { %v1185_v23 = vpop.permute.xlu1 %444  ;;  %v1187_v31 = vpop.permute.xlu0 %439 }
  0xd2   :  { %v1189_v32 = vpop.permute.xlu1 %454  ;;  %v1191_v33 = vpop.permute.xlu0 %449 }
  0xd6   :  { %v1193_v34 = vpop.permute.xlu1 %464  ;;  %v1195_v35 = vpop.permute.xlu0 %459 }
  0xda   :  { %v1200_v37 = vpop.permute.xlu1 %474  ;;  %v1205_v39 = vpop.permute.xlu0 %469 }
  0xde   :  { %v1222_v29 = vpop.permute.xlu1 %484  ;;  %v1227_v53 = vpop.permute.xlu0 %479 }
  0xdf   :  { %1549 = vst [vmem:[#allocation3_spill] sm:$0xff] %v1227_v53  ;;  %v249_v53 = vmul.f32 %v1125_v57, %v153_v56  ;;  %v378_v57 = vadd.f32 %v362_v2, %v250_v12  ;;  %v363_v56 = vmul.f32 %v1159_v46, %v267_v24  ;;  %v491_v12 = vmul.f32 %v1183_v22, %v395_v16  ;;  %v398_v24 = vld [vmem:[%s1487_s2 + $0x38] sm:$0xff] }
  0xe0   :  { %v366_v22 = vmul.f32 %v1161_v11, %v270_v18  ;;  %v159_v18 = vld [vmem:[%s1488_s0 + $0x40] sm:$0xff] }
  0xe1   :  { %v506_v36 = vadd.f32 %v490_v15, %v378_v57  ;;  %v380_v15 = vadd.f32 %v364_v55, %v252_v25  ;;  %v494_v55 = vmul.f32 %v1185_v23, %v398_v24 }
  0xe2   :  { %v543_v44 = vpop.permute.xlu1 %542  ;;  %v538_v45 = vpop.permute.xlu0 %537 }
  0xe3   :  { %v616_v26 = vmul.f32 %v543_v44, %v520_v0  ;;  %v615_v17 = vmul.f32 %v538_v45, %v519_v1  ;;  %v377_v0 = vadd.f32 %v361_v38, %v249_v53  ;;  %v269_v1 = vld [vmem:[%s1486_s1 + $0x30] sm:$0xff]  ;;  %v251_v38 = vmul.f32 %v1135_v7, %v155_v20  ;;  %v158_v44 = vld [vmem:[%s1488_s0 + $0x38] sm:$0xff]  ;;  %v524_v7 = vld [vmem:[%s1489_s3 + $0x28] sm:$0xff] }
  0xe4   :  { %v254_v11 = vmul.f32 %v1137_v61, %v158_v44  ;;  %v271_v20 = vld [vmem:[%s1486_s1 + $0x40] sm:$0xff]  ;;  %v508_v57 = vadd.f32 %v492_v43, %v380_v15  ;;  %v273_v44 = vld [vmem:[%s1486_s1 + $0x50] sm:$0xff]  ;;  %v402_v15 = vld [vmem:[%s1487_s2 + $0x58] sm:$0xff] }
  0xe5   :  { %v632_v60 = vadd.f32 %v616_v26, %v504_v14  ;;  %v631_v59 = vadd.f32 %v615_v17, %v503_v19  ;;  %v505_v58 = vadd.f32 %v489_v51, %v377_v0  ;;  %v157_v14 = vld [vmem:[%s1488_s0 + $0x30] sm:$0xff]  ;;  %v379_v19 = vadd.f32 %v363_v56, %v251_v38  ;;  %v400_v56 = vld [vmem:[%s1487_s2 + $0x48] sm:$0xff] }
  0xe6   :  { %v553_v2 = vpop.permute.xlu1 %552  ;;  %v548_v53 = vpop.permute.xlu0 %547  ;;  %v397_v26 = vld [vmem:[%s1487_s2 + $0x30] sm:$0xff]  ;;  %v365_v51 = vmul.f32 %v1163_v47, %v269_v1  ;;  %v367_v43 = vmul.f32 %v1167_v41, %v271_v20  ;;  %v275_v20 = vld [vmem:[%s1486_s1 + $0x60] sm:$0xff] }
  0xe7   :  { %648 = vst [vmem:[%s1490_s6 + $0x8] sm:$0xff] %v632_v60  ;;  %v618_v46 = vmul.f32 %v553_v2, %v522_v4  ;;  %647 = vst [vmem:[%s1490_s6] sm:$0xff] %v631_v59  ;;  %v617_v21 = vmul.f32 %v548_v53, %v521_v62  ;;  %v253_v60 = vmul.f32 %v1139_v13, %v157_v14  ;;  %v160_v62 = vld [vmem:[%s1488_s0 + $0x48] sm:$0xff]  ;;  %v526_v13 = vld [vmem:[%s1489_s3 + $0x38] sm:$0xff] }
  0xe8   :  { %v507_v61 = vadd.f32 %v491_v12, %v379_v19  ;;  %v493_v0 = vmul.f32 %v1187_v31, %v397_v26  ;;  %v382_v59 = vadd.f32 %v366_v22, %v254_v11  ;;  %v368_v31 = vmul.f32 %v1165_v10, %v272_v63  ;;  %v399_v2 = vld [vmem:[%s1487_s2 + $0x40] sm:$0xff]  ;;  %v525_v1 = vld [vmem:[%s1489_s3 + $0x30] sm:$0xff] }
  0xe9   :  { %v634_v45 = vadd.f32 %v618_v46, %v506_v36  ;;  %v633_v17 = vadd.f32 %v617_v21, %v505_v58  ;;  %v381_v36 = vadd.f32 %v365_v51, %v253_v60  ;;  %v274_v46 = vld [vmem:[%s1486_s1 + $0x58] sm:$0xff]  ;;  %v256_v10 = vmul.f32 %v1141_v5, %v160_v62  ;;  %v161_v22 = vld [vmem:[%s1488_s0 + $0x50] sm:$0xff]  ;;  %v527_v19 = vld [vmem:[%s1489_s3 + $0x40] sm:$0xff] }
  0xea   :  { %v563_v4 = vpop.permute.xlu1 %562  ;;  %v558_v16 = vpop.permute.xlu0 %557  ;;  %v510_v58 = vadd.f32 %v494_v55, %v382_v59  ;;  %v496_v12 = vmul.f32 %v1189_v32, %v400_v56  ;;  %v255_v21 = vmul.f32 %v1143_v27, %v159_v18  ;;  %v495_v14 = vmul.f32 %v1191_v33, %v399_v2  ;;  %v528_v27 = vld [vmem:[%s1489_s3 + $0x48] sm:$0xff]  ;;  %v529_v18 = vld [vmem:[%s1489_s3 + $0x50] sm:$0xff]  ;;  %v278_v2 = vld [vmem:[%s1486_s1 + $0x78] sm:$0xff] }
  0xeb   :  { %650 = vst [vmem:[%s1490_s6 + $0x18] sm:$0xff] %v634_v45  ;;  %v620_v47 = vmul.f32 %v563_v4, %v524_v7  ;;  %649 = vst [vmem:[%s1490_s6 + $0x10] sm:$0xff] %v633_v17  ;;  %v619_v23 = vmul.f32 %v558_v16, %v523_v28  ;;  %v162_v7 = vld [vmem:[%s1488_s0 + $0x58] sm:$0xff]  ;;  %v509_v5 = vadd.f32 %v493_v0, %v381_v36  ;;  %v401_v45 = vld [vmem:[%s1487_s2 + $0x50] sm:$0xff] }
  0xec   :  { %v384_v26 = vadd.f32 %v368_v31, %v256_v10  ;;  %v370_v33 = vmul.f32 %v1169_v49, %v274_v46  ;;  %v383_v51 = vadd.f32 %v367_v43, %v255_v21  ;;  %v369_v63 = vmul.f32 %v1171_v40, %v273_v44  ;;  %v276_v17 = vld [vmem:[%s1486_s1 + $0x68] sm:$0xff]  ;;  %v163_v0 = vld [vmem:[%s1488_s0 + $0x60] sm:$0xff]  ;;  %v277_v36 = vld [vmem:[%s1486_s1 + $0x70] sm:$0xff] }
  0xed   :  { %v636_v25 = vadd.f32 %v620_v47, %v508_v57  ;;  %v635_v53 = vadd.f32 %v619_v23, %v507_v61  ;;  %v258_v49 = vmul.f32 %v1145_v30, %v162_v7  ;;  %v498_v55 = vmul.f32 %v1193_v34, %v402_v15  ;;  %v164_v60 = vld [vmem:[%s1488_s0 + $0x68] sm:$0xff]  ;;  %v403_v23 = vld [vmem:[%s1487_s2 + $0x60] sm:$0xff]  ;;  %v166_v10 = vld [vmem:[%s1488_s0 + $0x78] sm:$0xff] }
  0xee   :  { %v573_v38 = vpop.permute.xlu1 %572  ;;  %v568_v24 = vpop.permute.xlu0 %567  ;;  %v512_v57 = vadd.f32 %v496_v12, %v384_v26  ;;  %v257_v16 = vmul.f32 %v1147_v42, %v161_v22  ;;  %v511_v30 = vadd.f32 %v495_v14, %v383_v51  ;;  %v497_v62 = vmul.f32 %v1195_v35, %v401_v45  ;;  %v404_v61 = vld [vmem:[%s1487_s2 + $0x68] sm:$0xff]  ;;  %v530_v42 = vld [vmem:[%s1489_s3 + $0x58] sm:$0xff]  ;;  %v165_v12 = vld [vmem:[%s1488_s0 + $0x70] sm:$0xff] }
  0xef   :  { %652 = vst [vmem:[%s1490_s6 + $0x28] sm:$0xff] %v636_v25  ;;  %v622_v41 = vmul.f32 %v573_v38, %v526_v13  ;;  %651 = vst [vmem:[%s1490_s6 + $0x20] sm:$0xff] %v635_v53  ;;  %v621_v32 = vmul.f32 %v568_v24, %v525_v1  ;;  %v386_v56 = vadd.f32 %v370_v33, %v258_v49  ;;  %v405_v24 = vld [vmem:[%s1487_s2 + $0x70] sm:$0xff]  ;;  %v531_v7 = vld [vmem:[%s1489_s3 + $0x60] sm:$0xff] }
  0xf0   :  { %v372_v35 = vmul.f32 %v1173_v6, %v276_v17  ;;  %v385_v59 = vadd.f32 %v369_v63, %v257_v16  ;;  %v371_v31 = vmul.f32 %v1175_v3, %v275_v20  ;;  %v260_v6 = vmul.f32 %v1149_v48, %v164_v60  ;;  %v533_v17 = vld [vmem:[%s1489_s3 + $0x70] sm:$0xff] }
  0xf1   :  { %v638_v28 = vadd.f32 %v622_v41, %v510_v58  ;;  %v637_v4 = vadd.f32 %v621_v32, %v509_v5  ;;  %v514_v43 = vadd.f32 %v498_v55, %v386_v56  ;;  %v500_v46 = vmul.f32 %v1200_v37, %v404_v61  ;;  %v406_v58 = vld [vmem:[%s1487_s2 + $0x78] sm:$0xff] }
  0xf2   :  { %v583_v11 = vpop.permute.xlu1 %582  ;;  %v578_v47 = vpop.permute.xlu0 %577  ;;  %v259_v38 = vmul.f32 %v1151_v50, %v163_v0  ;;  %v513_v48 = vadd.f32 %v497_v62, %v385_v59  ;;  %v499_v44 = vmul.f32 %v1205_v39, %v403_v23  ;;  %v532_v50 = vld [vmem:[%s1489_s3 + $0x68] sm:$0xff]  ;;  %v388_v41 = vadd.f32 %v372_v35, %v260_v6 }
  0xf3   :  { %654 = vst [vmem:[%s1490_s6 + $0x38] sm:$0xff] %v638_v28  ;;  %v624_v40 = vmul.f32 %v583_v11, %v528_v27  ;;  %653 = vst [vmem:[%s1490_s6 + $0x30] sm:$0xff] %v637_v4  ;;  %v623_v34 = vmul.f32 %v578_v47, %v527_v19  ;;  %v374_v39 = vmul.f32 %v1177_v9, %v278_v2  ;;  %v1550_v19 = vld [vmem:[#allocation3_spill] sm:$0xff] }
  0xf4   :  { %v387_v5 = vadd.f32 %v371_v31, %v259_v38  ;;  %v373_v14 = vmul.f32 %v1179_v8, %v277_v36  ;;  %v262_v27 = vmul.f32 %v1153_v52, %v166_v10  ;;  %v516_v22 = vadd.f32 %v500_v46, %v388_v41  ;;  %v534_v52 = vld [vmem:[%s1489_s3 + $0x78] sm:$0xff] }
  0xf5   :  { %v640_v13 = vadd.f32 %v624_v40, %v512_v57  ;;  %v639_v25 = vadd.f32 %v623_v34, %v511_v30  ;;  %v502_v26 = vmul.f32 %v1222_v29, %v406_v58  ;;  %v261_v45 = vmul.f32 %v1155_v54, %v165_v12 }
  0xf6   :  { %v593_v1 = vpop.permute.xlu1 %592  ;;  %v588_v53 = vpop.permute.xlu0 %587  ;;  %v515_v28 = vadd.f32 %v499_v44, %v387_v5  ;;  %v501_v51 = vmul.f32 %v1550_v19, %v405_v24  ;;  %v390_v29 = vadd.f32 %v374_v39, %v262_v27 }
  0xf7   :  { %656 = vst [vmem:[%s1490_s6 + $0x48] sm:$0xff] %v640_v13  ;;  %v626_v3 = vmul.f32 %v593_v1, %v530_v42  ;;  %655 = vst [vmem:[%s1490_s6 + $0x40] sm:$0xff] %v639_v25  ;;  %v625_v37 = vmul.f32 %v588_v53, %v529_v18  ;;  %v389_v4 = vadd.f32 %v373_v14, %v261_v45 }
  0xf8   :  { %v518_v49 = vadd.f32 %v502_v26, %v390_v29 }
  0xf9   :  { %v642_v21 = vadd.f32 %v626_v3, %v514_v43  ;;  %v641_v15 = vadd.f32 %v625_v37, %v513_v48  ;;  %v517_v55 = vadd.f32 %v501_v51, %v389_v4 }
  0xfa   :  { %v603_v32 = vpop.permute.xlu1 %602  ;;  %v598_v33 = vpop.permute.xlu0 %597 }
  0xfb   :  { %658 = vst [vmem:[%s1490_s6 + $0x58] sm:$0xff] %v642_v21  ;;  %v628_v9 = vmul.f32 %v603_v32, %v532_v50  ;;  %657 = vst [vmem:[%s1490_s6 + $0x50] sm:$0xff] %v641_v15  ;;  %v627_v8 = vmul.f32 %v598_v33, %v531_v7 }
  0xfd   :  { %v644_v63 = vadd.f32 %v628_v9, %v516_v22  ;;  %v643_v54 = vadd.f32 %v627_v8, %v515_v28 }
  0xfe   :  { %v613_v11 = vpop.permute.xlu1 %612  ;;  %v608_v57 = vpop.permute.xlu0 %607 }
  0xff   :  { %660 = vst [vmem:[%s1490_s6 + $0x68] sm:$0xff] %v644_v63  ;;  %v630_v20 = vmul.f32 %v613_v11, %v534_v52  ;;  %659 = vst [vmem:[%s1490_s6 + $0x60] sm:$0xff] %v643_v54  ;;  %v629_v40 = vmul.f32 %v608_v57, %v533_v17 }
 0x101   :  { %v646_v47 = vadd.f32 %v630_v20, %v518_v49  ;;  %v645_v16 = vadd.f32 %v629_v40, %v517_v55 }
 0x103   :  { %662 = vst [vmem:[%s1490_s6 + $0x78] sm:$0xff] %v646_v47  ;;  %661 = vst [vmem:[%s1490_s6 + $0x70] sm:$0xff] %v645_v16 }

// kernel: accel101_sfc_forward.14
= control target key start
LH: loop header
LB: loop body
LE: loop exit
PB: predicated region body
PF: predicated region fallthrough
CT: control target
= control target key end

     0   :  { %s701_s1 = inlined_call_operand.vmem [shape: bf16[256,128], index: 1, kind: input, shape index: {}]   ;;  %s702_s0 = inlined_call_operand.vmem [shape: bf16[128,256], index: 0, kind: input, shape index: {}]   ;;  %s703_s2 = inlined_call_operand.vmem [shape: f32[1,128], index: 2, kind: input, shape index: {}]   ;;  %s704_s3 = inlined_call_operand.vmem [shape: f32[128,128], index: 3, kind: output, shape index: {}]  }
   0x1   :  { %v476_v0 = vld [vmem:[%s701_s1 + $0x78] sm:$0xff]   ;;  %v478_v2 = vld [vmem:[%s701_s1 + $0x70] sm:$0xff]   ;;  %v480_v4 = vld [vmem:[%s701_s1 + $0x68] sm:$0xff]  }
   0x2   :  { %v477_v1 = vld [vmem:[%s701_s1 + $0x38] sm:$0xff]   ;;  %396 = vmatprep.subr.bf16.mxu0 %v476_v0  ;;  %460 = vmatprep.subr.bf16.mxu1 %v476_v0  ;;  %v479_v3 = vld [vmem:[%s701_s1 + $0x30] sm:$0xff]   ;;  %v481_v5 = vld [vmem:[%s701_s1 + $0x28] sm:$0xff]  }
   0x3   :  { %397 = vmatpush3.bf16.msra.mxu0 %v477_v1  ;;  %468 = vmatpush3.bf16.msra.mxu1 %v477_v1  ;;  %v482_v6 = vld [vmem:[%s701_s1 + $0x60] sm:$0xff]   ;;  %v484_v8 = vld [vmem:[%s701_s1 + $0x58] sm:$0xff]   ;;  %v486_v10 = vld [vmem:[%s701_s1 + $0x50] sm:$0xff]  }
   0x4   :  { %398 = vmatprep.subr.bf16.mxu0 %v478_v2  ;;  %461 = vmatprep.subr.bf16.mxu1 %v478_v2  ;;  %v483_v7 = vld [vmem:[%s701_s1 + $0x20] sm:$0xff]   ;;  %v485_v9 = vld [vmem:[%s701_s1 + $0x18] sm:$0xff]   ;;  %v487_v13 = vld [vmem:[%s701_s1 + $0x10] sm:$0xff]  }
   0x5   :  { %v494_v11 = vld [vmem:[%s702_s0 + $0x4] ss:$8 sps:$4 sm:$0xff]   ;;  %v492_v18 = vld [vmem:[%s702_s0] ss:$8 sps:$4 sm:$0xff]   ;;  %v498_v20 = vld [vmem:[%s702_s0 + $0x14] ss:$8 sps:$4 sm:$0xff]  }
   0x6   :  { %v497_v12 = vld [vmem:[%s702_s0 + $0x44] ss:$8 sps:$4 sm:$0xff]   ;;  %278 = vmatprep.mubr.bf16.mxu0 %v494_v11  ;;  %v495_v19 = vld [vmem:[%s702_s0 + $0x40] ss:$8 sps:$4 sm:$0xff]   ;;  %v500_v21 = vld [vmem:[%s702_s0 + $0x54] ss:$8 sps:$4 sm:$0xff]  }
   0x7   :  { %399 = vmatpush3.bf16.msra.mxu0 %v479_v3  ;;  %469 = vmatpush3.bf16.msra.mxu1 %v479_v3  ;;  %v488_v14 = vld [vmem:[%s701_s1 + $0x48] sm:$0xff]   ;;  %v490_v16 = vld [vmem:[%s701_s1 + $0x40] sm:$0xff]   ;;  %v502_v22 = vld [vmem:[%s702_s0 + $0x10] ss:$8 sps:$4 sm:$0xff]  }
   0x8   :  { %400 = vmatprep.subr.bf16.mxu0 %v480_v4  ;;  %462 = vmatprep.subr.bf16.mxu1 %v480_v4  ;;  %v489_v15 = vld [vmem:[%s701_s1 + $0x8] sm:$0xff]   ;;  %v491_v17 = vld [vmem:[%s701_s1] sm:$0xff]   ;;  %v503_v23 = vld [vmem:[%s702_s0 + $0x50] ss:$8 sps:$4 sm:$0xff]  }
   0x9   :  { %310 = vmatprep.mubr.bf16.mxu1 %v497_v12  ;;  %v504_v24 = vld [vmem:[%s702_s0 + $0x24] ss:$8 sps:$4 sm:$0xff]   ;;  %v508_v26 = vld [vmem:[%s702_s0 + $0x20] ss:$8 sps:$4 sm:$0xff]   ;;  %v510_v28 = vld [vmem:[%s702_s0 + $0x34] ss:$8 sps:$4 sm:$0xff]  }
   0xa   :  { %v506_v25 = vld [vmem:[%s702_s0 + $0x64] ss:$8 sps:$4 sm:$0xff]   ;;  %v509_v27 = vld [vmem:[%s702_s0 + $0x60] ss:$8 sps:$4 sm:$0xff]   ;;  %v512_v29 = vld [vmem:[%s702_s0 + $0x74] ss:$8 sps:$4 sm:$0xff]  }
   0xb   :  { %401 = vmatpush3.bf16.msra.mxu0 %v481_v5  ;;  %470 = vmatpush3.bf16.msra.mxu1 %v481_v5  ;;  %v514_v30 = vld [vmem:[%s702_s0 + $0x30] ss:$8 sps:$4 sm:$0xff]   ;;  %v635_v34 = vld [vmem:[%s703_s2] ss:$0 sm:$0xff] }
   0xc   :  { %402 = vmatprep.subr.bf16.mxu0 %v482_v6  ;;  %463 = vmatprep.subr.bf16.mxu1 %v482_v6  ;;  %v515_v31 = vld [vmem:[%s702_s0 + $0x70] ss:$8 sps:$4 sm:$0xff]  }
   0xf   :  { %403 = vmatpush3.bf16.msra.mxu0 %v483_v7  ;;  %471 = vmatpush3.bf16.msra.mxu1 %v483_v7 }
  0x10   :  { %404 = vmatprep.subr.bf16.mxu0 %v484_v8  ;;  %464 = vmatprep.subr.bf16.mxu1 %v484_v8 }
  0x13   :  { %405 = vmatpush3.bf16.msra.mxu0 %v485_v9  ;;  %472 = vmatpush3.bf16.msra.mxu1 %v485_v9 }
  0x14   :  { %406 = vmatprep.subr.bf16.mxu0 %v486_v10  ;;  %465 = vmatprep.subr.bf16.mxu1 %v486_v10 }
  0x17   :  { %407 = vmatpush3.bf16.msra.mxu0 %v487_v13  ;;  %473 = vmatpush3.bf16.msra.mxu1 %v487_v13 }
  0x18   :  { %408 = vmatprep.subr.bf16.mxu0 %v488_v14  ;;  %466 = vmatprep.subr.bf16.mxu1 %v488_v14 }
  0x1b   :  { %409 = vmatpush3.bf16.msra.mxu0 %v489_v15  ;;  %474 = vmatpush3.bf16.msra.mxu1 %v489_v15 }
  0x1c   :  { %410 = vmatprep.subr.bf16.mxu0 %v490_v16  ;;  %467 = vmatprep.subr.bf16.mxu1 %v490_v16 }
  0x1f   :  { %411 = vmatpush3.bf16.msra.mxu0 %v491_v17  ;;  %475 = vmatpush3.bf16.msra.mxu1 %v491_v17 }
  0x22   :  { %279 = vmatmul.mubr.bf16.vlgmr.msra.gmra.mxu0 %v492_v18  ;;  %311 = vmatmul.mubr.bf16.vlgmr.msra.gmra.mxu1 %v495_v19 }
  0x23   :  { %286 = vmatprep.mubr.bf16.mxu0 %v498_v20  ;;  %318 = vmatprep.mubr.bf16.mxu1 %v500_v21 }
  0x2a   :  { %287 = vmatmul.mubr.bf16.gmra.mxu0 %v502_v22  ;;  %319 = vmatmul.mubr.bf16.gmra.mxu1 %v503_v23 }
  0x2b   :  { %294 = vmatprep.mubr.bf16.mxu0 %v504_v24  ;;  %326 = vmatprep.mubr.bf16.mxu1 %v506_v25 }
  0x32   :  { %295 = vmatmul.mubr.bf16.gmra.mxu0 %v508_v26  ;;  %327 = vmatmul.mubr.bf16.gmra.mxu1 %v509_v27 }
  0x33   :  { %302 = vmatprep.mubr.bf16.mxu0 %v510_v28  ;;  %334 = vmatprep.mubr.bf16.mxu1 %v512_v29 }
  0x3a   :  { %303 = vmatmul.mubr.bf16.gmra.mxu0 %v514_v30  ;;  %335 = vmatmul.mubr.bf16.gmra.mxu1 %v515_v31 }
  0xe2   :  { %v412_v32 = vpop.f32.mrf.mxu0  ;;  %v436_v33 = vpop.f32.mrf.mxu1 }
  0xe4   :  { %v413_v35 = vpop.f32.mrf.mxu0  ;;  %v437_v36 = vpop.f32.mrf.mxu1 }
  0xe5   :  { %v414_v37 = vadd.f32 %v413_v35, %v412_v32  ;;  %v438_v38 = vadd.f32 %v437_v36, %v436_v33 }
  0xe6   :  { %v415_v39 = vpop.f32.mrf.mxu0  ;;  %v439_v40 = vpop.f32.mrf.mxu1 }
  0xe7   :  { %v281_v41 = vadd.f32 %v414_v37, %v635_v34  ;;  %v313_v42 = vadd.f32 %v438_v38, %v635_v34 }
  0xe8   :  { %v416_v43 = vpop.f32.mrf.mxu0  ;;  %v440_v44 = vpop.f32.mrf.mxu1 }
  0xe9   :  { %343 = vst [vmem:[%s704_s3] sm:$0xff] %v281_v41  ;;  %351 = vst [vmem:[%s704_s3 + $0x40] sm:$0xff] %v313_v42  ;;  %v417_v45 = vadd.f32 %v416_v43, %v415_v39  ;;  %v441_v46 = vadd.f32 %v440_v44, %v439_v40 }
  0xea   :  { %v418_v47 = vpop.f32.mrf.mxu0  ;;  %v442_v48 = vpop.f32.mrf.mxu1 }
  0xeb   :  { %v284_v49 = vadd.f32 %v417_v45, %v635_v34  ;;  %v316_v50 = vadd.f32 %v441_v46, %v635_v34 }
  0xec   :  { %v419_v51 = vpop.f32.mrf.mxu0  ;;  %v443_v52 = vpop.f32.mrf.mxu1 }
  0xed   :  { %344 = vst [vmem:[%s704_s3 + $0x8] sm:$0xff] %v284_v49  ;;  %352 = vst [vmem:[%s704_s3 + $0x48] sm:$0xff] %v316_v50  ;;  %v420_v53 = vadd.f32 %v419_v51, %v418_v47  ;;  %v444_v54 = vadd.f32 %v443_v52, %v442_v48 }
  0xee   :  { %v421_v55 = vpop.f32.mrf.mxu0  ;;  %v445_v56 = vpop.f32.mrf.mxu1 }
  0xef   :  { %v289_v57 = vadd.f32 %v420_v53, %v635_v34  ;;  %v321_v58 = vadd.f32 %v444_v54, %v635_v34 }
  0xf0   :  { %v422_v59 = vpop.f32.mrf.mxu0  ;;  %v446_v60 = vpop.f32.mrf.mxu1 }
  0xf1   :  { %345 = vst [vmem:[%s704_s3 + $0x10] sm:$0xff] %v289_v57  ;;  %353 = vst [vmem:[%s704_s3 + $0x50] sm:$0xff] %v321_v58  ;;  %v423_v61 = vadd.f32 %v422_v59, %v421_v55  ;;  %v447_v62 = vadd.f32 %v446_v60, %v445_v56 }
  0xf2   :  { %v424_v63 = vpop.f32.mrf.mxu0  ;;  %v448_v0 = vpop.f32.mrf.mxu1 }
  0xf3   :  { %v292_v1 = vadd.f32 %v423_v61, %v635_v34  ;;  %v324_v2 = vadd.f32 %v447_v62, %v635_v34 }
  0xf4   :  { %v425_v3 = vpop.f32.mrf.mxu0  ;;  %v449_v4 = vpop.f32.mrf.mxu1 }
  0xf5   :  { %346 = vst [vmem:[%s704_s3 + $0x18] sm:$0xff] %v292_v1  ;;  %354 = vst [vmem:[%s704_s3 + $0x58] sm:$0xff] %v324_v2  ;;  %v426_v5 = vadd.f32 %v425_v3, %v424_v63  ;;  %v450_v6 = vadd.f32 %v449_v4, %v448_v0 }
  0xf6   :  { %v427_v7 = vpop.f32.mrf.mxu0  ;;  %v451_v8 = vpop.f32.mrf.mxu1 }
  0xf7   :  { %v297_v9 = vadd.f32 %v426_v5, %v635_v34  ;;  %v329_v10 = vadd.f32 %v450_v6, %v635_v34 }
  0xf8   :  { %v428_v11 = vpop.f32.mrf.mxu0  ;;  %v452_v12 = vpop.f32.mrf.mxu1 }
  0xf9   :  { %347 = vst [vmem:[%s704_s3 + $0x20] sm:$0xff] %v297_v9  ;;  %355 = vst [vmem:[%s704_s3 + $0x60] sm:$0xff] %v329_v10  ;;  %v429_v13 = vadd.f32 %v428_v11, %v427_v7  ;;  %v453_v14 = vadd.f32 %v452_v12, %v451_v8 }
  0xfa   :  { %v430_v15 = vpop.f32.mrf.mxu0  ;;  %v454_v16 = vpop.f32.mrf.mxu1 }
  0xfb   :  { %v300_v17 = vadd.f32 %v429_v13, %v635_v34  ;;  %v332_v18 = vadd.f32 %v453_v14, %v635_v34 }
  0xfc   :  { %v431_v19 = vpop.f32.mrf.mxu0  ;;  %v455_v20 = vpop.f32.mrf.mxu1 }
  0xfd   :  { %348 = vst [vmem:[%s704_s3 + $0x28] sm:$0xff] %v300_v17  ;;  %356 = vst [vmem:[%s704_s3 + $0x68] sm:$0xff] %v332_v18  ;;  %v432_v21 = vadd.f32 %v431_v19, %v430_v15  ;;  %v456_v22 = vadd.f32 %v455_v20, %v454_v16 }
  0xfe   :  { %v433_v23 = vpop.f32.mrf.mxu0  ;;  %v457_v24 = vpop.f32.mrf.mxu1 }
  0xff   :  { %v305_v25 = vadd.f32 %v432_v21, %v635_v34  ;;  %v337_v26 = vadd.f32 %v456_v22, %v635_v34 }
 0x100   :  { %v434_v27 = vpop.f32.mrf.mxu0  ;;  %v458_v28 = vpop.f32.mrf.mxu1 }
 0x101   :  { %349 = vst [vmem:[%s704_s3 + $0x30] sm:$0xff] %v305_v25  ;;  %357 = vst [vmem:[%s704_s3 + $0x70] sm:$0xff] %v337_v26  ;;  %v435_v29 = vadd.f32 %v434_v27, %v433_v23  ;;  %v459_v30 = vadd.f32 %v458_v28, %v457_v24 }
 0x103   :  { %v308_v31 = vadd.f32 %v435_v29, %v635_v34  ;;  %v340_v32 = vadd.f32 %v459_v30, %v635_v34 }
 0x105   :  { %350 = vst [vmem:[%s704_s3 + $0x38] sm:$0xff] %v308_v31  ;;  %358 = vst [vmem:[%s704_s3 + $0x78] sm:$0xff] %v340_v32 }

// kernel: accel101_sfc_forward.15
= control target key start
LH: loop header
LB: loop body
LE: loop exit
PB: predicated region body
PF: predicated region fallthrough
CT: control target
= control target key end

     0   :  { %s1075_s15 = smov 0   ;;  %s1077_s16 = smov 0   ;;  %s1218_s0 = inlined_call_operand.vmem [shape: f32[2,8,8,15], index: 0, kind: input, shape index: {}, may-alias: {0,1,2}]   ;;  %s1219_s1 = inlined_call_operand.vmem [shape: f32[2,8,8,15], index: 1, kind: input, shape index: {}, may-alias: {0,1,2}]   ;;  %s1220_s2 = inlined_call_operand.vmem [shape: f32[2,8,8,15], index: 2, kind: input, shape index: {}, may-alias: {0,1,2}]   ;;  %s1221_s3 = inlined_call_operand.vmem [shape: f32[32,8], index: 3, kind: input, shape index: {}]   ;;  %s1222_s4 = inlined_call_operand.vmem [shape: f32[2,32,32,15], index: 4, kind: output, shape index: {}]  }
   0x1   :  { %s1079_s17 = smov 0   ;;  %s1081_s18 = smov 0  }
   0x2   :  { %s1083_s19 = smov 0  }
   0x3 LB: > { %s23_s20 = sadd.s32 1, %s1040_s17  ;;  %s26_s21 = sadd.s32 1, %s1044_s18  ;;  %s1048_s19 = sphi %s1083_s19, %s14_s19   ;;  %s1044_s18 = sphi %s1081_s18, %s1227_s18   ;;  %s1040_s17 = sphi %s1079_s17, %s1226_s17   ;;  %s1036_s16 = sphi %s1077_s16, %s1225_s16   ;;  %s1032_s15 = sphi %s1075_s15, %s1224_s15  }
   0x4   : > { %p24_p0 = scmp.ge.s32.totalorder %s23_s20, 8  ;;  %p866_p1 = scmp.ge.s32.totalorder %s1048_s19, 1 }
   0x5   : > { %p235_p2 = scmp.lt.s32.totalorder %s1048_s19, 17 }
   0x6   : > { %s1229_s20 = smov (%p24_p0, %s23_s20), 0  ;;  %s1231_s21 = smov (!%p24_p0, %s26_s21), %s1044_s18 }
   0x7   : > { %p236_p3 = pnand %p866_p1, %p235_p2  ;;  %p28_p4 = scmp.ge.s32.totalorder %s1231_s21, 2 }
   0x8   : > { %s867_s22 = sadd.s32 (!%p236_p3), 4294967295, %s1032_s15  ;;  %p294_p5 = scmp.lt.s32.totalorder (!%p236_p3), %s1036_s16, 1 }
   0x9   : > { %s1233_s21 = smov (%p28_p4, %s1231_s21), 0  ;;  %239 = sbr.rel (%p236_p3) target bundleno = 236 (0xec), region = 36 }
   0xa   : > { %p292_p6 = scmp.gt.s32.totalorder (!%p236_p3), %s867_s22, 0  ;;  %p868_p7 = scmp.lt.s32.totalorder (!%p236_p3), %s867_s22, 7 }
   0xb   : > { %p307_p8 = scmp.lt.s32.totalorder (!%p236_p3), %s1032_s15, 7  ;;  %s313_s11 = sadd.s32 (!%p236_p3), 1, %s1032_s15 }
   0xc   : > { %p1129_p9 = scmp.lt.s32.totalorder (!%p236_p3), %s313_s11, 7 }
   0xe   : > { %v341_v0 = vld [vmem:[%s1221_s3] sm:$0xff]  ;;  %vm348_vm0 = vcmask 64512   ;;  %s1235_s16 = smov (!%p294_p5, %s1036_s16), 1  ;;  %s1237_s22 = smov (!%p292_p6, %s867_s22), 0  ;;  %v342_v9 = vld [vmem:[%s1221_s3 + $0x8] sm:$0xff]  ;;  %v343_v10 = vld [vmem:[%s1221_s3 + $0x10] sm:$0xff] }
   0xf   : > { %940 = vmatprep.mubr.msk.f32.mxu0 %vm348_vm0, %v341_v0  ;;  %948 = vmatprep.mubr.msk.f32.mxu1 %vm348_vm0, %v341_v0  ;;  %s1116_s25 = sshll.u32 %s1235_s16, 3  ;;  %s1239_s22 = smov (!%p868_p7, %s1237_s22), 7  ;;  %v344_v11 = vld [vmem:[%s1221_s3 + $0x18] sm:$0xff]  ;;  %vm446_vm1 = vcmask 121856  }
  0x10   : > { %s308_s26 = scalar_select %p307_p8, %s1032_s15, 7 }
  0x11   : > { %s299_s27 = sadd.s32 %s1239_s22, %s1116_s25  ;;  %s1241_s11 = smov (!%p1129_p9, %s313_s11), 7 }
  0x12   : > { %s874_s28 = sshll.u32 %s299_s27, 3  ;;  %s310_s29 = sadd.s32 %s1116_s25, %s308_s26 }
  0x13   : > { %s301_s6 = scalar_lea.vmem %s1218_s0, %s874_s28  ;;  %s876_s7 = sshll.u32 %s310_s29, 3 }
  0x14   : > { %s312_s10 = scalar_lea.vmem %s1219_s1, %s876_s7  ;;  %v338_v1 = vld [vmem:[%s301_s6] sm:$0xff]  ;;  %s1243_s11 = smov (!%p1129_p9, %s1241_s11), 7 }
  0x15   : > { %v339_v2 = vld [vmem:[%s312_s10] sm:$0xff]  ;;  %v345_v3 = vmul.f32 0.375, %v338_v1  ;;  %v451_v4 = vmul.f32 0.125, %v338_v1  ;;  %s321_s27 = sadd.s32 %s1116_s25, %s1243_s11  ;;  %s882_s25 = sshll.u32 %s1032_s15, 2 }
  0x16   : > { %v346_v5 = vmul.f32 0.625, %v339_v2  ;;  %v452_v6 = vmul.f32 0.875, %v339_v2  ;;  %s881_s28 = sshll.u32 %s321_s27, 3  ;;  %p330_p10 = scmp.lt.s32.totalorder %s882_s25, 31 }
  0x17   : > { %s323_s5 = scalar_lea.vmem %s1220_s2, %s881_s28  ;;  %s884_s7 = sshll.u32 %s1235_s16, 7 }
  0x18   : > { %v347_v7 = vadd.f32 %v346_v5, %v345_v3  ;;  %v453_v8 = vadd.f32 %v452_v6, %v451_v4  ;;  %v340_v12 = vld [vmem:[%s323_s5] sm:$0xff]  ;;  %s1245_s25 = smov (!%p330_p10, %s882_s25), 31 }
  0x19   : > { %v544_v13 = vmul.f32 0.125, %v340_v12  ;;  %v636_v14 = vmul.f32 0.375, %v340_v12  ;;  %s883_s6 = sshll.u32 %s1245_s25, 2 }
  0x1a   : > { %938 = vmatprep.subr.mxu0 %v347_v7  ;;  %946 = vmatprep.subr.mxu1 %v453_v8  ;;  %s334_s8 = sadd.s32 %s884_s7, %s883_s6 }
  0x1b   : > { %939 = vmatpush3.msra.mxu0 %v347_v7  ;;  %947 = vmatpush3.msra.mxu1 %v453_v8  ;;  %v545_v15 = vadd.f32 %v544_v13, %v452_v6  ;;  %v637_v16 = vadd.f32 %v636_v14, %v346_v5  ;;  %s885_s9 = sshll.u32 %s334_s8, 3 }
  0x1c   : > { %941 = vmatmul.mubr.msk.f32.vlgmr.msra.gmra.mxu0 %vm348_vm0, %v342_v9  ;;  %949 = vmatmul.mubr.msk.f32.vlgmr.msra.gmra.mxu1 %vm348_vm0, %v342_v9  ;;  %s1169_s12 = scalar_lea.vmem %s1222_s4, %s885_s9 }
  0x1d   : > { %943 = vmatprep.mubr.msk.f32.mxu0 %vm348_vm0, %v343_v10  ;;  %951 = vmatprep.mubr.msk.f32.mxu1 %vm348_vm0, %v343_v10 }
  0x1e   : > { %954 = vmatprep.subr.mxu0 %v545_v15  ;;  %962 = vmatprep.subr.mxu1 %v637_v16 }
  0x1f   : > { %955 = vmatpush3.msra.mxu0 %v545_v15  ;;  %963 = vmatpush3.msra.mxu1 %v637_v16 }
  0x20   : > { %944 = vmatmul.mubr.msk.f32.gmra.mxu0 %vm348_vm0, %v344_v11  ;;  %952 = vmatmul.mubr.msk.f32.gmra.mxu1 %vm348_vm0, %v344_v11 }
  0x21   : > { %956 = vmatprep.mubr.msk.f32.mxu0 %vm348_vm0, %v341_v0  ;;  %964 = vmatprep.mubr.msk.f32.mxu1 %vm348_vm0, %v341_v0 }
  0x24   : > { %957 = vmatmul.mubr.msk.f32.vlgmr.msra.gmra.mxu0 %vm348_vm0, %v342_v9  ;;  %965 = vmatmul.mubr.msk.f32.vlgmr.msra.gmra.mxu1 %vm348_vm0, %v342_v9 }
  0x25   : > { %959 = vmatprep.mubr.msk.f32.mxu0 %vm348_vm0, %v343_v10  ;;  %967 = vmatprep.mubr.msk.f32.mxu1 %vm348_vm0, %v343_v10 }
  0x28   : > { %960 = vmatmul.mubr.msk.f32.gmra.mxu0 %vm348_vm0, %v344_v11  ;;  %968 = vmatmul.mubr.msk.f32.gmra.mxu1 %vm348_vm0, %v344_v11 }
  0xdc   : > { %v942_v17 = vpop.f32.mrf.mxu0  ;;  %v950_v18 = vpop.f32.mrf.mxu1 }
  0xdd   : > { %448 = vst.msk [vmem:[%s1169_s12 + $0x8] sm:$0xff] %vm446_vm1, %v942_v17  ;;  %895 = vst.msk [vmem:[%s1169_s12 + $0x28] sm:$0xff] %vm446_vm1, %v950_v18 }
  0xde   : > { %v427_v19 = vpop.f32.mrf.mxu0  ;;  %v520_v20 = vpop.f32.mrf.mxu1 }
  0xdf   : > { %447 = vst.msk [vmem:[%s1169_s12] sm:$0xff] %vm446_vm1, %v427_v19  ;;  %894 = vst.msk [vmem:[%s1169_s12 + $0x20] sm:$0xff] %vm446_vm1, %v520_v20 }
  0xe0   : > { %v945_v21 = vpop.f32.mrf.mxu0  ;;  %v953_v22 = vpop.f32.mrf.mxu1 }
  0xe1   : > { %450 = vst.msk [vmem:[%s1169_s12 + $0x18] sm:$0xff] %vm446_vm1, %v945_v21  ;;  %897 = vst.msk [vmem:[%s1169_s12 + $0x38] sm:$0xff] %vm446_vm1, %v953_v22 }
  0xe2   : > { %v437_v23 = vpop.f32.mrf.mxu0  ;;  %v530_v24 = vpop.f32.mrf.mxu1 }
  0xe3   : > { %449 = vst.msk [vmem:[%s1169_s12 + $0x10] sm:$0xff] %vm446_vm1, %v437_v23  ;;  %896 = vst.msk [vmem:[%s1169_s12 + $0x30] sm:$0xff] %vm446_vm1, %v530_v24 }
  0xe4   : > { %v958_v25 = vpop.f32.mrf.mxu0  ;;  %v966_v26 = vpop.f32.mrf.mxu1 }
  0xe5   : > { %903 = vst.msk [vmem:[%s1169_s12 + $0x48] sm:$0xff] %vm446_vm1, %v958_v25  ;;  %911 = vst.msk [vmem:[%s1169_s12 + $0x68] sm:$0xff] %vm446_vm1, %v966_v26 }
  0xe6   : > { %v612_v27 = vpop.f32.mrf.mxu0  ;;  %v704_v28 = vpop.f32.mrf.mxu1 }
  0xe7   : > { %902 = vst.msk [vmem:[%s1169_s12 + $0x40] sm:$0xff] %vm446_vm1, %v612_v27  ;;  %910 = vst.msk [vmem:[%s1169_s12 + $0x60] sm:$0xff] %vm446_vm1, %v704_v28 }
  0xe8   : > { %v961_v29 = vpop.f32.mrf.mxu0  ;;  %v969_v30 = vpop.f32.mrf.mxu1 }
  0xe9   : > { %905 = vst.msk [vmem:[%s1169_s12 + $0x58] sm:$0xff] %vm446_vm1, %v961_v29  ;;  %913 = vst.msk [vmem:[%s1169_s12 + $0x78] sm:$0xff] %vm446_vm1, %v969_v30 }
  0xea   : > { %v622_v31 = vpop.f32.mrf.mxu0  ;;  %v714_v32 = vpop.f32.mrf.mxu1 }
  0xeb   : > { %904 = vst.msk [vmem:[%s1169_s12 + $0x50] sm:$0xff] %vm446_vm1, %v622_v31  ;;  %912 = vst.msk [vmem:[%s1169_s12 + $0x70] sm:$0xff] %vm446_vm1, %v714_v32 }
  0xec PF: > { %s14_s19 = sadd.s32 1, %s1048_s19   ;;  %s1224_s15 = smov %s1040_s17 }
  0xed   : > { %p11_p11 = scmp.ge.s32.totalorder %s14_s19, 18   ;;  %s1225_s16 = smov %s1044_s18 }
  0xee   : > { %s1226_s17 = smov %s1229_s20  ;;  %s1227_s18 = smov %s1233_s21 }
  0xef   :  { %13 = sbr.rel (!%p11_p11) target bundleno = 3 (0x3), region = 75 }

</bundles_post_ra>
